<compile_context>
chip_gen: v5e
topology: v5e:2x2
jax: 0.10.0
libtpu: 0.0.40
codegen_flags: <defaults>
</compile_context>

<pallas_src>
import functools

import numpy as np
import jax
import jax.numpy as jnp
from jax import lax
from jax.experimental import pallas as pl
from jax.experimental.pallas import tpu as pltpu

_NUM_CORES = 2        # leading "parallel" grid axis (both TCs on v7x)
_CHUNK = 512          # lanes per in-kernel strip-mined chunk (4 vregs/slab)
_MAX_TB = 16384       # lanes per grid tile -> 48*16384*4 B = 3 MiB block
_LN2 = float(np.log(2.0))


def _cdiv(a, b):
    return -(-a // b)


def _round_up(a, b):
    return _cdiv(a, b) * b


def _distance_loss_kernel(p_ref, out_ref,
                          acc_dist, acc_sq, acc_hub, acc_bce,
                          acc_ang, acc_sec, acc_sx, acc_sy,
                          *, n_chunks):
    """Processes one (48, tb) lane-dense tile.

    Slab rows: [0:8]=x0 [8:16]=x1 [16:24]=y0 [24:32]=y1
               [32:40]=angle_label [40:48]=angle_pred
    sin_error / cos_error and the `ratio` tensor of the reference are dead
    code (never returned) and are omitted.
    """
    t = pl.program_id(1)
    nt = pl.num_programs(1)
    accs = (acc_dist, acc_sq, acc_hub, acc_bce, acc_ang, acc_sec, acc_sx, acc_sy)

    @pl.when(t == 0)
    def _init():
        for acc in accs:
            acc[...] = jnp.zeros_like(acc)

    def lane_fold(v):
        # (8, _CHUNK) -> (8, 128): lane-aligned vreg adds (pure VPU, no XLU).
        r = v[:, 0:128]
        for k in range(1, _CHUNK // 128):
            r = r + v[:, k * 128:(k + 1) * 128]
        return r

    def body(ci, carry):
        off = pl.multiple_of(ci * _CHUNK, _CHUNK)
        sl = pl.ds(off, _CHUNK)
        # Every operand is a full (8, _CHUNK) slab.
        x0 = p_ref[0:8, sl]
        x1 = p_ref[8:16, sl]
        y0 = p_ref[16:24, sl]
        y1 = p_ref[24:32, sl]
        al = p_ref[32:40, sl]
        ap = p_ref[40:48, sl]

        # distance / MSE (unscaled; the exact *100 / *1e4 factors are applied
        # to the reduced sums in the wrapper).
        d0 = x0 - y0
        d1 = x1 - y1
        sq = d0 * d0 + d1 * d1
        dist = jnp.sqrt(sq)

        # Huber on the normalized vectors (scale invariant); rsqrt on the
        # squared norm, zero-norm guarded exactly like the reference.
        nx2 = x0 * x0 + x1 * x1
        ny2 = y0 * y0 + y1 * y1
        rnx = lax.rsqrt(jnp.where(nx2 == 0.0, 1.0, nx2))
        rny = lax.rsqrt(jnp.where(ny2 == 0.0, 1.0, ny2))
        h0 = x0 * rnx - y0 * rny
        h1 = x1 * rnx - y1 * rny
        a0 = jnp.abs(h0)
        a1 = jnp.abs(h1)
        hub = (jnp.where(a0 < 1.0, 0.5 * h0 * h0, a0 - 0.5)
               + jnp.where(a1 < 1.0, 0.5 * h1 * h1, a1 - 0.5))

        # angle & BCE-with-logits(over, 0) == softplus(over); over >= 0 so
        # softplus(over) = over + log1p(exp(-over)).  Accumulate (bce - ln2):
        # zero-padded samples contribute ~0 (no per-chunk mask), ln2 is added
        # back once in the wrapper.
        ang = jnp.abs(al - ap)
        over = ang * jnp.float32(1.0 / np.pi)
        bce = over + jnp.log1p(jnp.exp(-over)) - jnp.float32(_LN2)

        # wrong sector: per-component wrong direction, OR over components.
        magic0 = jnp.logical_and(x0 == 0.0, y0 == 0.0)
        magic1 = jnp.logical_and(x1 == 0.0, y1 == 0.0)
        w0 = jnp.logical_and(x0 * y0 <= 0.0, jnp.logical_not(magic0))
        w1 = jnp.logical_and(x1 * y1 <= 0.0, jnp.logical_not(magic1))
        sec = jnp.logical_or(w0, w1).astype(jnp.float32)

        acc_dist[...] += lane_fold(dist)
        acc_sq[...] += lane_fold(sq)
        acc_hub[...] += lane_fold(hub)
        acc_bce[...] += lane_fold(bce)
        acc_ang[...] += lane_fold(ang)
        acc_sec[...] += lane_fold(sec)
        acc_sx[...] += lane_fold(x0)
        acc_sy[...] += lane_fold(x1)
        return carry

    lax.fori_loop(0, n_chunks, body, 0)

    # Finalize once per core: cross-lane reduce each accumulator and emit the
    # eight raw sums into lanes 0..7 of sublane 0 with a single full store.
    @pl.when(t == nt - 1)
    def _finalize():
        lane = lax.broadcasted_iota(jnp.int32, (8, 128), 1)
        sub = lax.broadcasted_iota(jnp.int32, (8, 128), 0)
        row = jnp.zeros((8, 128), jnp.float32)
        for k, acc in enumerate(accs):
            s = jnp.sum(acc[...])
            row = row + jnp.where(jnp.logical_and(sub == 0, lane == k), s, 0.0)
        out_ref[...] = row


def distance_loss(x, y):
    """Pallas-backed equivalent of DistanceLoss.forward(x, y)."""
    x = jnp.asarray(x, jnp.float32)
    y2 = jnp.asarray(y, jnp.float32)[:, :2]
    B = int(x.shape[0])

    # TODO(synk): atan2 has no guaranteed Mosaic lowering; the two angle rows
    # are computed in plain-JAX wrapper glue (atan2 is invariant to the *100
    # scaling, so no extra scaling pass is needed).
    ang_lbl = jnp.arctan2(y2[:, 1], y2[:, 0])
    ang_prd = jnp.arctan2(x[:, 1], x[:, 0])

    # ---- static tiling: 2 cores x tiles_per_core x tb lanes, tb % CHUNK == 0
    lanes_needed = max(1, _cdiv(B, 8))
    per_core = max(1, _cdiv(lanes_needed, _NUM_CORES))
    tb = min(_round_up(per_core, _CHUNK), _MAX_TB)
    tpc = _cdiv(per_core, tb)
    total_lanes = _NUM_CORES * tpc * tb
    b_pad = 8 * total_lanes
    pad = b_pad - B

    # Full-sublane slab packing: (48, total_lanes); zero padding contributes
    # exactly 0 to every accumulated term (BCE's ln2 handled in-kernel).
    def slab(q):
        return jnp.pad(q, (0, pad)).reshape(8, total_lanes)

    packed = jnp.concatenate(
        [slab(q) for q in (x[:, 0], x[:, 1], y2[:, 0], y2[:, 1], ang_lbl, ang_prd)],
        axis=0)  # (48, total_lanes)

    kernel = functools.partial(_distance_loss_kernel, n_chunks=tb // _CHUNK)

    out = pl.pallas_call(
        kernel,
        out_shape=jax.ShapeDtypeStruct((_NUM_CORES * 8, 128), jnp.float32),
        grid=(_NUM_CORES, tpc),
        in_specs=[pl.BlockSpec((48, tb), lambda c, t: (0, c * tpc + t))],
        out_specs=pl.BlockSpec((8, 128), lambda c, t: (c, 0)),
        scratch_shapes=[pltpu.VMEM((8, 128), jnp.float32) for _ in range(8)],
        compiler_params=pltpu.CompilerParams(
            dimension_semantics=("parallel", "arbitrary")),
        cost_estimate=pl.CostEstimate(
            flops=50 * b_pad,
            transcendentals=5 * b_pad,
            bytes_accessed=48 * total_lanes * 4 + _NUM_CORES * 8 * 128 * 4),
    )(packed)

    # Combine the per-core raw sums and normalize / scale once on 8 scalars.
    sums = jnp.sum(out.reshape(_NUM_CORES, 8, 128)[:, 0, :8], axis=0)
    inv_b = jnp.float32(1.0 / B)
    distance = sums[0] * (jnp.float32(100.0) * inv_b)
    mse = sums[1] * jnp.float32(10000.0) * (0.5 * inv_b)    # mean over 2B, *100^2
    hub = sums[2] * (0.5 * inv_b)                           # mean over 2B
    bce = sums[3] * inv_b + jnp.float32(_LN2)               # mean over B
    loss = mse + hub + bce
    angle = sums[4] * inv_b * jnp.float32(180.0 / np.pi)
    sector = sums[5] * inv_b
    avg_x = sums[6] * (jnp.float32(100.0) * inv_b)
    avg_y = sums[7] * (jnp.float32(100.0) * inv_b)

    return {"loss": loss, "distance": distance, "angle_XY": angle,
            "sector": sector, "avg_x": avg_x, "avg_y": avg_y}


def _reference(x, y):
    """Pure-JAX mirror of the torch module (for the self-check)."""
    lx = jnp.asarray(x, jnp.float32) * 100.0
    ly = jnp.asarray(y, jnp.float32)[:, :2] * 100.0
    d = jnp.abs(lx - ly)
    distance = jnp.mean(jnp.linalg.norm(d, axis=1))
    ang_l = jnp.arctan2(ly[:, 1], ly[:, 0])
    ang_p = jnp.arctan2(lx[:, 1], lx[:, 0])
    ang = jnp.abs(ang_l - ang_p)
    over = ang / jnp.pi
    nx = jnp.linalg.norm(lx, axis=-1, keepdims=True)
    ny = jnp.linalg.norm(ly, axis=-1, keepdims=True)
    nx = jnp.where(nx == 0.0, 1.0, nx)
    ny = jnp.where(ny == 0.0, 1.0, ny)
    tx = lx / nx
    ty = ly / ny
    magic = jnp.logical_and(lx == 0.0, ly == 0.0)
    wrong = jnp.logical_and(lx * ly <= 0.0, jnp.logical_not(magic))
    sector = jnp.mean(jnp.logical_or(wrong[:, 0], wrong[:, 1]).astype(jnp.float32))
    mse = jnp.mean((lx - ly) ** 2)
    hd = jnp.abs(tx - ty)
    hub = jnp.mean(jnp.where(hd < 1.0, 0.5 * hd * hd, hd - 0.5))
    bce = jnp.mean(over + jnp.log1p(jnp.exp(-over)))
    return {"loss": mse + hub + bce, "distance": distance,
            "angle_XY": jnp.mean(ang) * 180.0 / np.pi, "sector": sector,
            "avg_x": jnp.mean(lx[:, 0]), "avg_y": jnp.mean(lx[:, 1])}


if __name__ == "__main__":
    key = jax.random.PRNGKey(0)
    kx, ky = jax.random.split(key)
    B = 8
    x = jax.random.normal(kx, (B, 2), dtype=jnp.float32)   # predictions (B, 2)
    y = jax.random.normal(ky, (B, 4), dtype=jnp.float32)   # labels; only y[:, :2] used

    # mirrors the torch NaN asserts
    assert int(jnp.isnan(x).sum()) == 0
    assert int(jnp.isnan(y).sum()) == 0

    result = distance_loss(x, y)
    result = jax.tree_util.tree_map(jax.block_until_ready, result)

    ref = _reference(x, y)
    for k in result:
        np.testing.assert_allclose(np.asarray(result[k]), np.asarray(ref[k]),
                                    rtol=5e-3, atol=5e-3)
    print("KERNEL_OK")
</pallas_src>

<mosaic_0001>
module attributes {stable_mosaic.version = 11 : i64} {
  func.func @_distance_loss_kernel(%arg0: i32, %arg1: i32, %arg2: memref<48x512xf32, #tpu.memory_space<vmem>>, %arg3: memref<8x128xf32, #tpu.memory_space<vmem>>, %arg4: memref<8x128xf32, #tpu.memory_space<vmem>>, %arg5: memref<8x128xf32, #tpu.memory_space<vmem>>, %arg6: memref<8x128xf32, #tpu.memory_space<vmem>>, %arg7: memref<8x128xf32, #tpu.memory_space<vmem>>, %arg8: memref<8x128xf32, #tpu.memory_space<vmem>>, %arg9: memref<8x128xf32, #tpu.memory_space<vmem>>, %arg10: memref<8x128xf32, #tpu.memory_space<vmem>>, %arg11: memref<8x128xf32, #tpu.memory_space<vmem>>) attributes {dimension_semantics = [#tpu.dimension_semantics<parallel>, #tpu.dimension_semantics<arbitrary>], iteration_bounds = array<i64: 2, 1>, scalar_prefetch = 0 : i64, scratch_operands = 8 : i64, tpu.core_type = #tpu.core_type<tc>, window_params = [{transform_indices = @transform_0, window_bounds = array<i64: 48, 512>}, {transform_indices = @transform_1, window_bounds = array<i64: 8, 128>}]} {
    %c0_i32 = arith.constant 0 : i32
    %0 = arith.cmpi eq, %arg1, %c0_i32 : i32
    %1 = arith.extui %0 : i1 to i32
    %c0_i32_0 = arith.constant 0 : i32
    %2 = arith.cmpi ne, %1, %c0_i32_0 : i32
    scf.if %2 {
      %cst_56 = arith.constant 0.000000e+00 : f32
      %181 = vector.broadcast %cst_56 : f32 to vector<8x128xf32>
      %c0_57 = arith.constant 0 : index
      %c0_58 = arith.constant 0 : index
      %182 = vector.load %arg4[%c0_57, %c0_58] : memref<8x128xf32, #tpu.memory_space<vmem>>, vector<8x128xf32>
      tpu.vector_store %arg4[%c0_57, %c0_58], %181 {strides = array<i32>} : memref<8x128xf32, #tpu.memory_space<vmem>>, vector<8x128xf32>,
      %cst_59 = arith.constant 0.000000e+00 : f32
      %183 = vector.broadcast %cst_59 : f32 to vector<8x128xf32>
      %c0_60 = arith.constant 0 : index
      %c0_61 = arith.constant 0 : index
      %184 = vector.load %arg5[%c0_60, %c0_61] : memref<8x128xf32, #tpu.memory_space<vmem>>, vector<8x128xf32>
      tpu.vector_store %arg5[%c0_60, %c0_61], %183 {strides = array<i32>} : memref<8x128xf32, #tpu.memory_space<vmem>>, vector<8x128xf32>,
      %cst_62 = arith.constant 0.000000e+00 : f32
      %185 = vector.broadcast %cst_62 : f32 to vector<8x128xf32>
      %c0_63 = arith.constant 0 : index
      %c0_64 = arith.constant 0 : index
      %186 = vector.load %arg6[%c0_63, %c0_64] : memref<8x128xf32, #tpu.memory_space<vmem>>, vector<8x128xf32>
      tpu.vector_store %arg6[%c0_63, %c0_64], %185 {strides = array<i32>} : memref<8x128xf32, #tpu.memory_space<vmem>>, vector<8x128xf32>,
      %cst_65 = arith.constant 0.000000e+00 : f32
      %187 = vector.broadcast %cst_65 : f32 to vector<8x128xf32>
      %c0_66 = arith.constant 0 : index
      %c0_67 = arith.constant 0 : index
      %188 = vector.load %arg7[%c0_66, %c0_67] : memref<8x128xf32, #tpu.memory_space<vmem>>, vector<8x128xf32>
      tpu.vector_store %arg7[%c0_66, %c0_67], %187 {strides = array<i32>} : memref<8x128xf32, #tpu.memory_space<vmem>>, vector<8x128xf32>,
      %cst_68 = arith.constant 0.000000e+00 : f32
      %189 = vector.broadcast %cst_68 : f32 to vector<8x128xf32>
      %c0_69 = arith.constant 0 : index
      %c0_70 = arith.constant 0 : index
      %190 = vector.load %arg8[%c0_69, %c0_70] : memref<8x128xf32, #tpu.memory_space<vmem>>, vector<8x128xf32>
      tpu.vector_store %arg8[%c0_69, %c0_70], %189 {strides = array<i32>} : memref<8x128xf32, #tpu.memory_space<vmem>>, vector<8x128xf32>,
      %cst_71 = arith.constant 0.000000e+00 : f32
      %191 = vector.broadcast %cst_71 : f32 to vector<8x128xf32>
      %c0_72 = arith.constant 0 : index
      %c0_73 = arith.constant 0 : index
      %192 = vector.load %arg9[%c0_72, %c0_73] : memref<8x128xf32, #tpu.memory_space<vmem>>, vector<8x128xf32>
      tpu.vector_store %arg9[%c0_72, %c0_73], %191 {strides = array<i32>} : memref<8x128xf32, #tpu.memory_space<vmem>>, vector<8x128xf32>,
      %cst_74 = arith.constant 0.000000e+00 : f32
      %193 = vector.broadcast %cst_74 : f32 to vector<8x128xf32>
      %c0_75 = arith.constant 0 : index
      %c0_76 = arith.constant 0 : index
      %194 = vector.load %arg10[%c0_75, %c0_76] : memref<8x128xf32, #tpu.memory_space<vmem>>, vector<8x128xf32>
      tpu.vector_store %arg10[%c0_75, %c0_76], %193 {strides = array<i32>} : memref<8x128xf32, #tpu.memory_space<vmem>>, vector<8x128xf32>,
      %cst_77 = arith.constant 0.000000e+00 : f32
      %195 = vector.broadcast %cst_77 : f32 to vector<8x128xf32>
      %c0_78 = arith.constant 0 : index
      %c0_79 = arith.constant 0 : index
      %196 = vector.load %arg11[%c0_78, %c0_79] : memref<8x128xf32, #tpu.memory_space<vmem>>, vector<8x128xf32>
      tpu.vector_store %arg11[%c0_78, %c0_79], %195 {strides = array<i32>} : memref<8x128xf32, #tpu.memory_space<vmem>>, vector<8x128xf32>,
    } else {
    }
    %c0_i32_1 = arith.constant 0 : i32
    %c512_i32 = arith.constant 512 : i32
    %3 = arith.muli %c0_i32_1, %c512_i32 : i32
    %4 = tpu.assume_multiple %3, 512 : i32
    %c0 = arith.constant 0 : index
    %5 = arith.index_cast %4 : i32 to index
    %6 = vector.load %arg2[%c0, %5] : memref<48x512xf32, #tpu.memory_space<vmem>>, vector<8x512xf32>
    %c8 = arith.constant 8 : index
    %7 = arith.index_cast %4 : i32 to index
    %8 = vector.load %arg2[%c8, %7] : memref<48x512xf32, #tpu.memory_space<vmem>>, vector<8x512xf32>
    %c16 = arith.constant 16 : index
    %9 = arith.index_cast %4 : i32 to index
    %10 = vector.load %arg2[%c16, %9] : memref<48x512xf32, #tpu.memory_space<vmem>>, vector<8x512xf32>
    %c24 = arith.constant 24 : index
    %11 = arith.index_cast %4 : i32 to index
    %12 = vector.load %arg2[%c24, %11] : memref<48x512xf32, #tpu.memory_space<vmem>>, vector<8x512xf32>
    %c32 = arith.constant 32 : index
    %13 = arith.index_cast %4 : i32 to index
    %14 = vector.load %arg2[%c32, %13] : memref<48x512xf32, #tpu.memory_space<vmem>>, vector<8x512xf32>
    %c40 = arith.constant 40 : index
    %15 = arith.index_cast %4 : i32 to index
    %16 = vector.load %arg2[%c40, %15] : memref<48x512xf32, #tpu.memory_space<vmem>>, vector<8x512xf32>
    %17 = arith.subf %6, %10 : vector<8x512xf32>
    %18 = arith.subf %8, %12 : vector<8x512xf32>
    %19 = arith.mulf %17, %17 : vector<8x512xf32>
    %20 = arith.mulf %18, %18 : vector<8x512xf32>
    %21 = arith.addf %19, %20 : vector<8x512xf32>
    %22 = math.sqrt %21 : vector<8x512xf32>
    %23 = arith.mulf %6, %6 : vector<8x512xf32>
    %24 = arith.mulf %8, %8 : vector<8x512xf32>
    %25 = arith.addf %23, %24 : vector<8x512xf32>
    %26 = arith.mulf %10, %10 : vector<8x512xf32>
    %27 = arith.mulf %12, %12 : vector<8x512xf32>
    %28 = arith.addf %26, %27 : vector<8x512xf32>
    %cst = arith.constant 0.000000e+00 : f32
    %29 = vector.broadcast %cst : f32 to vector<8x512xf32>
    %30 = arith.cmpf oeq, %25, %29 : vector<8x512xf32>
    %cst_2 = arith.constant 1.000000e+00 : f32
    %31 = vector.broadcast %cst_2 : f32 to vector<8x512xf32>
    %32 = arith.select %30, %31, %25 : vector<8x512xi1>, vector<8x512xf32>
    %33 = math.rsqrt %32 : vector<8x512xf32>
    %cst_3 = arith.constant 0.000000e+00 : f32
    %34 = vector.broadcast %cst_3 : f32 to vector<8x512xf32>
    %35 = arith.cmpf oeq, %28, %34 : vector<8x512xf32>
    %cst_4 = arith.constant 1.000000e+00 : f32
    %36 = vector.broadcast %cst_4 : f32 to vector<8x512xf32>
    %37 = arith.select %35, %36, %28 : vector<8x512xi1>, vector<8x512xf32>
    %38 = math.rsqrt %37 : vector<8x512xf32>
    %39 = arith.mulf %6, %33 : vector<8x512xf32>
    %40 = arith.mulf %10, %38 : vector<8x512xf32>
    %41 = arith.subf %39, %40 : vector<8x512xf32>
    %42 = arith.mulf %8, %33 : vector<8x512xf32>
    %43 = arith.mulf %12, %38 : vector<8x512xf32>
    %44 = arith.subf %42, %43 : vector<8x512xf32>
    %45 = math.absf %41 : vector<8x512xf32>
    %46 = math.absf %44 : vector<8x512xf32>
    %cst_5 = arith.constant 1.000000e+00 : f32
    %47 = vector.broadcast %cst_5 : f32 to vector<8x512xf32>
    %48 = arith.cmpf olt, %45, %47 : vector<8x512xf32>
    %cst_6 = arith.constant 5.000000e-01 : f32
    %49 = vector.broadcast %cst_6 : f32 to vector<8x512xf32>
    %50 = arith.mulf %49, %41 : vector<8x512xf32>
    %51 = arith.mulf %50, %41 : vector<8x512xf32>
    %cst_7 = arith.constant 5.000000e-01 : f32
    %52 = vector.broadcast %cst_7 : f32 to vector<8x512xf32>
    %53 = arith.subf %45, %52 : vector<8x512xf32>
    %54 = arith.select %48, %51, %53 : vector<8x512xi1>, vector<8x512xf32>
    %cst_8 = arith.constant 1.000000e+00 : f32
    %55 = vector.broadcast %cst_8 : f32 to vector<8x512xf32>
    %56 = arith.cmpf olt, %46, %55 : vector<8x512xf32>
    %cst_9 = arith.constant 5.000000e-01 : f32
    %57 = vector.broadcast %cst_9 : f32 to vector<8x512xf32>
    %58 = arith.mulf %57, %44 : vector<8x512xf32>
    %59 = arith.mulf %58, %44 : vector<8x512xf32>
    %cst_10 = arith.constant 5.000000e-01 : f32
    %60 = vector.broadcast %cst_10 : f32 to vector<8x512xf32>
    %61 = arith.subf %46, %60 : vector<8x512xf32>
    %62 = arith.select %56, %59, %61 : vector<8x512xi1>, vector<8x512xf32>
    %63 = arith.addf %54, %62 : vector<8x512xf32>
    %64 = arith.subf %14, %16 : vector<8x512xf32>
    %65 = math.absf %64 : vector<8x512xf32>
    %cst_11 = arith.constant 0.318309873 : f32
    %66 = vector.broadcast %cst_11 : f32 to vector<8x512xf32>
    %67 = arith.mulf %65, %66 : vector<8x512xf32>
    %cst_12 = arith.constant 0.000000e+00 : f32
    %68 = vector.broadcast %cst_12 : f32 to vector<8x512xf32>
    %69 = arith.subf %68, %67 : vector<8x512xf32>
    %70 = math.exp %69 : vector<8x512xf32>
    %71 = math.log1p %70 : vector<8x512xf32>
    %72 = arith.addf %67, %71 : vector<8x512xf32>
    %cst_13 = arith.constant 0.693147182 : f32
    %73 = vector.broadcast %cst_13 : f32 to vector<8x512xf32>
    %74 = arith.subf %72, %73 : vector<8x512xf32>
    %cst_14 = arith.constant 0.000000e+00 : f32
    %75 = vector.broadcast %cst_14 : f32 to vector<8x512xf32>
    %76 = arith.cmpf oeq, %6, %75 : vector<8x512xf32>
    %cst_15 = arith.constant 0.000000e+00 : f32
    %77 = vector.broadcast %cst_15 : f32 to vector<8x512xf32>
    %78 = arith.cmpf oeq, %10, %77 : vector<8x512xf32>
    %79 = arith.andi %76, %78 : vector<8x512xi1>
    %cst_16 = arith.constant 0.000000e+00 : f32
    %80 = vector.broadcast %cst_16 : f32 to vector<8x512xf32>
    %81 = arith.cmpf oeq, %8, %80 : vector<8x512xf32>
    %cst_17 = arith.constant 0.000000e+00 : f32
    %82 = vector.broadcast %cst_17 : f32 to vector<8x512xf32>
    %83 = arith.cmpf oeq, %12, %82 : vector<8x512xf32>
    %84 = arith.andi %81, %83 : vector<8x512xi1>
    %85 = arith.mulf %6, %10 : vector<8x512xf32>
    %cst_18 = arith.constant 0.000000e+00 : f32
    %86 = vector.broadcast %cst_18 : f32 to vector<8x512xf32>
    %87 = arith.cmpf ole, %85, %86 : vector<8x512xf32>
    %cst_19 = arith.constant dense<true> : vector<8x512xi1>
    %88 = arith.xori %79, %cst_19 : vector<8x512xi1>
    %89 = arith.andi %87, %88 : vector<8x512xi1>
    %90 = arith.mulf %8, %12 : vector<8x512xf32>
    %cst_20 = arith.constant 0.000000e+00 : f32
    %91 = vector.broadcast %cst_20 : f32 to vector<8x512xf32>
    %92 = arith.cmpf ole, %90, %91 : vector<8x512xf32>
    %cst_21 = arith.constant dense<true> : vector<8x512xi1>
    %93 = arith.xori %84, %cst_21 : vector<8x512xi1>
    %94 = arith.andi %92, %93 : vector<8x512xi1>
    %95 = arith.ori %89, %94 : vector<8x512xi1>
    %96 = arith.extui %95 : vector<8x512xi1> to vector<8x512xi32>
    %97 = arith.sitofp %96 : vector<8x512xi32> to vector<8x512xf32>
    %c0_22 = arith.constant 0 : index
    %c0_23 = arith.constant 0 : index
    %98 = vector.load %arg4[%c0_22, %c0_23] : memref<8x128xf32, #tpu.memory_space<vmem>>, vector<8x128xf32>
    %99 = vector.extract_strided_slice %22 {offsets = [0, 0], sizes = [8, 128], strides = [1, 1]} : vector<8x512xf32> to vector<8x128xf32>
    %100 = vector.extract_strided_slice %22 {offsets = [0, 128], sizes = [8, 128], strides = [1, 1]} : vector<8x512xf32> to vector<8x128xf32>
    %101 = arith.addf %99, %100 : vector<8x128xf32>
    %102 = vector.extract_strided_slice %22 {offsets = [0, 256], sizes = [8, 128], strides = [1, 1]} : vector<8x512xf32> to vector<8x128xf32>
    %103 = arith.addf %101, %102 : vector<8x128xf32>
    %104 = vector.extract_strided_slice %22 {offsets = [0, 384], sizes = [8, 128], strides = [1, 1]} : vector<8x512xf32> to vector<8x128xf32>
    %105 = arith.addf %103, %104 : vector<8x128xf32>
    %106 = arith.addf %98, %105 : vector<8x128xf32>
    %c0_24 = arith.constant 0 : index
    %c0_25 = arith.constant 0 : index
    %107 = vector.load %arg4[%c0_24, %c0_25] : memref<8x128xf32, #tpu.memory_space<vmem>>, vector<8x128xf32>
    tpu.vector_store %arg4[%c0_24, %c0_25], %106 {strides = array<i32>} : memref<8x128xf32, #tpu.memory_space<vmem>>, vector<8x128xf32>,
    %c0_26 = arith.constant 0 : index
    %c0_27 = arith.constant 0 : index
    %108 = vector.load %arg5[%c0_26, %c0_27] : memref<8x128xf32, #tpu.memory_space<vmem>>, vector<8x128xf32>
    %109 = vector.extract_strided_slice %21 {offsets = [0, 0], sizes = [8, 128], strides = [1, 1]} : vector<8x512xf32> to vector<8x128xf32>
    %110 = vector.extract_strided_slice %21 {offsets = [0, 128], sizes = [8, 128], strides = [1, 1]} : vector<8x512xf32> to vector<8x128xf32>
    %111 = arith.addf %109, %110 : vector<8x128xf32>
    %112 = vector.extract_strided_slice %21 {offsets = [0, 256], sizes = [8, 128], strides = [1, 1]} : vector<8x512xf32> to vector<8x128xf32>
    %113 = arith.addf %111, %112 : vector<8x128xf32>
    %114 = vector.extract_strided_slice %21 {offsets = [0, 384], sizes = [8, 128], strides = [1, 1]} : vector<8x512xf32> to vector<8x128xf32>
    %115 = arith.addf %113, %114 : vector<8x128xf32>
    %116 = arith.addf %108, %115 : vector<8x128xf32>
    %c0_28 = arith.constant 0 : index
    %c0_29 = arith.constant 0 : index
    %117 = vector.load %arg5[%c0_28, %c0_29] : memref<8x128xf32, #tpu.memory_space<vmem>>, vector<8x128xf32>
    tpu.vector_store %arg5[%c0_28, %c0_29], %116 {strides = array<i32>} : memref<8x128xf32, #tpu.memory_space<vmem>>, vector<8x128xf32>,
    %c0_30 = arith.constant 0 : index
    %c0_31 = arith.constant 0 : index
    %118 = vector.load %arg6[%c0_30, %c0_31] : memref<8x128xf32, #tpu.memory_space<vmem>>, vector<8x128xf32>
    %119 = vector.extract_strided_slice %63 {offsets = [0, 0], sizes = [8, 128], strides = [1, 1]} : vector<8x512xf32> to vector<8x128xf32>
    %120 = vector.extract_strided_slice %63 {offsets = [0, 128], sizes = [8, 128], strides = [1, 1]} : vector<8x512xf32> to vector<8x128xf32>
    %121 = arith.addf %119, %120 : vector<8x128xf32>
    %122 = vector.extract_strided_slice %63 {offsets = [0, 256], sizes = [8, 128], strides = [1, 1]} : vector<8x512xf32> to vector<8x128xf32>
    %123 = arith.addf %121, %122 : vector<8x128xf32>
    %124 = vector.extract_strided_slice %63 {offsets = [0, 384], sizes = [8, 128], strides = [1, 1]} : vector<8x512xf32> to vector<8x128xf32>
    %125 = arith.addf %123, %124 : vector<8x128xf32>
    %126 = arith.addf %118, %125 : vector<8x128xf32>
    %c0_32 = arith.constant 0 : index
    %c0_33 = arith.constant 0 : index
    %127 = vector.load %arg6[%c0_32, %c0_33] : memref<8x128xf32, #tpu.memory_space<vmem>>, vector<8x128xf32>
    tpu.vector_store %arg6[%c0_32, %c0_33], %126 {strides = array<i32>} : memref<8x128xf32, #tpu.memory_space<vmem>>, vector<8x128xf32>,
    %c0_34 = arith.constant 0 : index
    %c0_35 = arith.constant 0 : index
    %128 = vector.load %arg7[%c0_34, %c0_35] : memref<8x128xf32, #tpu.memory_space<vmem>>, vector<8x128xf32>
    %129 = vector.extract_strided_slice %74 {offsets = [0, 0], sizes = [8, 128], strides = [1, 1]} : vector<8x512xf32> to vector<8x128xf32>
    %130 = vector.extract_strided_slice %74 {offsets = [0, 128], sizes = [8, 128], strides = [1, 1]} : vector<8x512xf32> to vector<8x128xf32>
    %131 = arith.addf %129, %130 : vector<8x128xf32>
    %132 = vector.extract_strided_slice %74 {offsets = [0, 256], sizes = [8, 128], strides = [1, 1]} : vector<8x512xf32> to vector<8x128xf32>
    %133 = arith.addf %131, %132 : vector<8x128xf32>
    %134 = vector.extract_strided_slice %74 {offsets = [0, 384], sizes = [8, 128], strides = [1, 1]} : vector<8x512xf32> to vector<8x128xf32>
    %135 = arith.addf %133, %134 : vector<8x128xf32>
    %136 = arith.addf %128, %135 : vector<8x128xf32>
    %c0_36 = arith.constant 0 : index
    %c0_37 = arith.constant 0 : index
    %137 = vector.load %arg7[%c0_36, %c0_37] : memref<8x128xf32, #tpu.memory_space<vmem>>, vector<8x128xf32>
    tpu.vector_store %arg7[%c0_36, %c0_37], %136 {strides = array<i32>} : memref<8x128xf32, #tpu.memory_space<vmem>>, vector<8x128xf32>,
    %c0_38 = arith.constant 0 : index
    %c0_39 = arith.constant 0 : index
    %138 = vector.load %arg8[%c0_38, %c0_39] : memref<8x128xf32, #tpu.memory_space<vmem>>, vector<8x128xf32>
    %139 = vector.extract_strided_slice %65 {offsets = [0, 0], sizes = [8, 128], strides = [1, 1]} : vector<8x512xf32> to vector<8x128xf32>
    %140 = vector.extract_strided_slice %65 {offsets = [0, 128], sizes = [8, 128], strides = [1, 1]} : vector<8x512xf32> to vector<8x128xf32>
    %141 = arith.addf %139, %140 : vector<8x128xf32>
    %142 = vector.extract_strided_slice %65 {offsets = [0, 256], sizes = [8, 128], strides = [1, 1]} : vector<8x512xf32> to vector<8x128xf32>
    %143 = arith.addf %141, %142 : vector<8x128xf32>
    %144 = vector.extract_strided_slice %65 {offsets = [0, 384], sizes = [8, 128], strides = [1, 1]} : vector<8x512xf32> to vector<8x128xf32>
    %145 = arith.addf %143, %144 : vector<8x128xf32>
    %146 = arith.addf %138, %145 : vector<8x128xf32>
    %c0_40 = arith.constant 0 : index
    %c0_41 = arith.constant 0 : index
    %147 = vector.load %arg8[%c0_40, %c0_41] : memref<8x128xf32, #tpu.memory_space<vmem>>, vector<8x128xf32>
    tpu.vector_store %arg8[%c0_40, %c0_41], %146 {strides = array<i32>} : memref<8x128xf32, #tpu.memory_space<vmem>>, vector<8x128xf32>,
    %c0_42 = arith.constant 0 : index
    %c0_43 = arith.constant 0 : index
    %148 = vector.load %arg9[%c0_42, %c0_43] : memref<8x128xf32, #tpu.memory_space<vmem>>, vector<8x128xf32>
    %149 = vector.extract_strided_slice %97 {offsets = [0, 0], sizes = [8, 128], strides = [1, 1]} : vector<8x512xf32> to vector<8x128xf32>
    %150 = vector.extract_strided_slice %97 {offsets = [0, 128], sizes = [8, 128], strides = [1, 1]} : vector<8x512xf32> to vector<8x128xf32>
    %151 = arith.addf %149, %150 : vector<8x128xf32>
    %152 = vector.extract_strided_slice %97 {offsets = [0, 256], sizes = [8, 128], strides = [1, 1]} : vector<8x512xf32> to vector<8x128xf32>
    %153 = arith.addf %151, %152 : vector<8x128xf32>
    %154 = vector.extract_strided_slice %97 {offsets = [0, 384], sizes = [8, 128], strides = [1, 1]} : vector<8x512xf32> to vector<8x128xf32>
    %155 = arith.addf %153, %154 : vector<8x128xf32>
    %156 = arith.addf %148, %155 : vector<8x128xf32>
    %c0_44 = arith.constant 0 : index
    %c0_45 = arith.constant 0 : index
    %157 = vector.load %arg9[%c0_44, %c0_45] : memref<8x128xf32, #tpu.memory_space<vmem>>, vector<8x128xf32>
    tpu.vector_store %arg9[%c0_44, %c0_45], %156 {strides = array<i32>} : memref<8x128xf32, #tpu.memory_space<vmem>>, vector<8x128xf32>,
    %c0_46 = arith.constant 0 : index
    %c0_47 = arith.constant 0 : index
    %158 = vector.load %arg10[%c0_46, %c0_47] : memref<8x128xf32, #tpu.memory_space<vmem>>, vector<8x128xf32>
    %159 = vector.extract_strided_slice %6 {offsets = [0, 0], sizes = [8, 128], strides = [1, 1]} : vector<8x512xf32> to vector<8x128xf32>
    %160 = vector.extract_strided_slice %6 {offsets = [0, 128], sizes = [8, 128], strides = [1, 1]} : vector<8x512xf32> to vector<8x128xf32>
    %161 = arith.addf %159, %160 : vector<8x128xf32>
    %162 = vector.extract_strided_slice %6 {offsets = [0, 256], sizes = [8, 128], strides = [1, 1]} : vector<8x512xf32> to vector<8x128xf32>
    %163 = arith.addf %161, %162 : vector<8x128xf32>
    %164 = vector.extract_strided_slice %6 {offsets = [0, 384], sizes = [8, 128], strides = [1, 1]} : vector<8x512xf32> to vector<8x128xf32>
    %165 = arith.addf %163, %164 : vector<8x128xf32>
    %166 = arith.addf %158, %165 : vector<8x128xf32>
    %c0_48 = arith.constant 0 : index
    %c0_49 = arith.constant 0 : index
    %167 = vector.load %arg10[%c0_48, %c0_49] : memref<8x128xf32, #tpu.memory_space<vmem>>, vector<8x128xf32>
    tpu.vector_store %arg10[%c0_48, %c0_49], %166 {strides = array<i32>} : memref<8x128xf32, #tpu.memory_space<vmem>>, vector<8x128xf32>,
    %c0_50 = arith.constant 0 : index
    %c0_51 = arith.constant 0 : index
    %168 = vector.load %arg11[%c0_50, %c0_51] : memref<8x128xf32, #tpu.memory_space<vmem>>, vector<8x128xf32>
    %169 = vector.extract_strided_slice %8 {offsets = [0, 0], sizes = [8, 128], strides = [1, 1]} : vector<8x512xf32> to vector<8x128xf32>
    %170 = vector.extract_strided_slice %8 {offsets = [0, 128], sizes = [8, 128], strides = [1, 1]} : vector<8x512xf32> to vector<8x128xf32>
    %171 = arith.addf %169, %170 : vector<8x128xf32>
    %172 = vector.extract_strided_slice %8 {offsets = [0, 256], sizes = [8, 128], strides = [1, 1]} : vector<8x512xf32> to vector<8x128xf32>
    %173 = arith.addf %171, %172 : vector<8x128xf32>
    %174 = vector.extract_strided_slice %8 {offsets = [0, 384], sizes = [8, 128], strides = [1, 1]} : vector<8x512xf32> to vector<8x128xf32>
    %175 = arith.addf %173, %174 : vector<8x128xf32>
    %176 = arith.addf %168, %175 : vector<8x128xf32>
    %c0_52 = arith.constant 0 : index
    %c0_53 = arith.constant 0 : index
    %177 = vector.load %arg11[%c0_52, %c0_53] : memref<8x128xf32, #tpu.memory_space<vmem>>, vector<8x128xf32>
    tpu.vector_store %arg11[%c0_52, %c0_53], %176 {strides = array<i32>} : memref<8x128xf32, #tpu.memory_space<vmem>>, vector<8x128xf32>,
    %c1_i32 = arith.constant 1 : i32
    %c0_i32_54 = arith.constant 0 : i32
    %178 = arith.cmpi eq, %arg1, %c0_i32_54 : i32
    %179 = arith.extui %178 : i1 to i32
    %c0_i32_55 = arith.constant 0 : i32
    %180 = arith.cmpi ne, %179, %c0_i32_55 : i32
    scf.if %180 {
      %181 = tpu.iota {dimensions = array<i32: 1>} : vector<8x128xi32>
      %182 = tpu.iota {dimensions = array<i32: 0>} : vector<8x128xi32>
      %cst_56 = arith.constant 0.000000e+00 : f32
      %183 = vector.broadcast %cst_56 : f32 to vector<8x128xf32>
      %c0_57 = arith.constant 0 : index
      %c0_58 = arith.constant 0 : index
      %184 = vector.load %arg4[%c0_57, %c0_58] : memref<8x128xf32, #tpu.memory_space<vmem>>, vector<8x128xf32>
      %185 = vector.shape_cast %184 : vector<8x128xf32> to vector<1x8x128xf32>
      %cst_59 = arith.constant dense<0.000000e+00> : vector<1xf32>
      %186 = vector.multi_reduction <add>, %185, %cst_59 [1, 2] : vector<1x8x128xf32> to vector<1xf32>
      %187 = vector.shape_cast %186 : vector<1xf32> to vector<1x1x1xf32>
      %188 = vector.extract %187[0, 0, 0] : f32 from vector<1x1x1xf32>
      %c0_i32_60 = arith.constant 0 : i32
      %189 = vector.broadcast %c0_i32_60 : i32 to vector<8x128xi32>
      %190 = arith.cmpi eq, %182, %189 : vector<8x128xi32>
      %c0_i32_61 = arith.constant 0 : i32
      %191 = vector.broadcast %c0_i32_61 : i32 to vector<8x128xi32>
      %192 = arith.cmpi eq, %181, %191 : vector<8x128xi32>
      %193 = arith.andi %190, %192 : vector<8x128xi1>
      %cst_62 = arith.constant 0.000000e+00 : f32
      %194 = vector.broadcast %188 : f32 to vector<8x128xf32>
      %195 = vector.broadcast %cst_62 : f32 to vector<8x128xf32>
      %196 = arith.select %193, %194, %195 : vector<8x128xi1>, vector<8x128xf32>
      %197 = arith.addf %183, %196 : vector<8x128xf32>
      %c0_63 = arith.constant 0 : index
      %c0_64 = arith.constant 0 : index
      %198 = vector.load %arg5[%c0_63, %c0_64] : memref<8x128xf32, #tpu.memory_space<vmem>>, vector<8x128xf32>
      %199 = vector.shape_cast %198 : vector<8x128xf32> to vector<1x8x128xf32>
      %cst_65 = arith.constant dense<0.000000e+00> : vector<1xf32>
      %200 = vector.multi_reduction <add>, %199, %cst_65 [1, 2] : vector<1x8x128xf32> to vector<1xf32>
      %201 = vector.shape_cast %200 : vector<1xf32> to vector<1x1x1xf32>
      %202 = vector.extract %201[0, 0, 0] : f32 from vector<1x1x1xf32>
      %c0_i32_66 = arith.constant 0 : i32
      %203 = vector.broadcast %c0_i32_66 : i32 to vector<8x128xi32>
      %204 = arith.cmpi eq, %182, %203 : vector<8x128xi32>
      %c1_i32_67 = arith.constant 1 : i32
      %205 = vector.broadcast %c1_i32_67 : i32 to vector<8x128xi32>
      %206 = arith.cmpi eq, %181, %205 : vector<8x128xi32>
      %207 = arith.andi %204, %206 : vector<8x128xi1>
      %cst_68 = arith.constant 0.000000e+00 : f32
      %208 = vector.broadcast %202 : f32 to vector<8x128xf32>
      %209 = vector.broadcast %cst_68 : f32 to vector<8x128xf32>
      %210 = arith.select %207, %208, %209 : vector<8x128xi1>, vector<8x128xf32>
      %211 = arith.addf %197, %210 : vector<8x128xf32>
      %c0_69 = arith.constant 0 : index
      %c0_70 = arith.constant 0 : index
      %212 = vector.load %arg6[%c0_69, %c0_70] : memref<8x128xf32, #tpu.memory_space<vmem>>, vector<8x128xf32>
      %213 = vector.shape_cast %212 : vector<8x128xf32> to vector<1x8x128xf32>
      %cst_71 = arith.constant dense<0.000000e+00> : vector<1xf32>
      %214 = vector.multi_reduction <add>, %213, %cst_71 [1, 2] : vector<1x8x128xf32> to vector<1xf32>
      %215 = vector.shape_cast %214 : vector<1xf32> to vector<1x1x1xf32>
      %216 = vector.extract %215[0, 0, 0] : f32 from vector<1x1x1xf32>
      %c0_i32_72 = arith.constant 0 : i32
      %217 = vector.broadcast %c0_i32_72 : i32 to vector<8x128xi32>
      %218 = arith.cmpi eq, %182, %217 : vector<8x128xi32>
      %c2_i32 = arith.constant 2 : i32
      %219 = vector.broadcast %c2_i32 : i32 to vector<8x128xi32>
      %220 = arith.cmpi eq, %181, %219 : vector<8x128xi32>
      %221 = arith.andi %218, %220 : vector<8x128xi1>
      %cst_73 = arith.constant 0.000000e+00 : f32
      %222 = vector.broadcast %216 : f32 to vector<8x128xf32>
      %223 = vector.broadcast %cst_73 : f32 to vector<8x128xf32>
      %224 = arith.select %221, %222, %223 : vector<8x128xi1>, vector<8x128xf32>
      %225 = arith.addf %211, %224 : vector<8x128xf32>
      %c0_74 = arith.constant 0 : index
      %c0_75 = arith.constant 0 : index
      %226 = vector.load %arg7[%c0_74, %c0_75] : memref<8x128xf32, #tpu.memory_space<vmem>>, vector<8x128xf32>
      %227 = vector.shape_cast %226 : vector<8x128xf32> to vector<1x8x128xf32>
      %cst_76 = arith.constant dense<0.000000e+00> : vector<1xf32>
      %228 = vector.multi_reduction <add>, %227, %cst_76 [1, 2] : vector<1x8x128xf32> to vector<1xf32>
      %229 = vector.shape_cast %228 : vector<1xf32> to vector<1x1x1xf32>
      %230 = vector.extract %229[0, 0, 0] : f32 from vector<1x1x1xf32>
      %c0_i32_77 = arith.constant 0 : i32
      %231 = vector.broadcast %c0_i32_77 : i32 to vector<8x128xi32>
      %232 = arith.cmpi eq, %182, %231 : vector<8x128xi32>
      %c3_i32 = arith.constant 3 : i32
      %233 = vector.broadcast %c3_i32 : i32 to vector<8x128xi32>
      %234 = arith.cmpi eq, %181, %233 : vector<8x128xi32>
      %235 = arith.andi %232, %234 : vector<8x128xi1>
      %cst_78 = arith.constant 0.000000e+00 : f32
      %236 = vector.broadcast %230 : f32 to vector<8x128xf32>
      %237 = vector.broadcast %cst_78 : f32 to vector<8x128xf32>
      %238 = arith.select %235, %236, %237 : vector<8x128xi1>, vector<8x128xf32>
      %239 = arith.addf %225, %238 : vector<8x128xf32>
      %c0_79 = arith.constant 0 : index
      %c0_80 = arith.constant 0 : index
      %240 = vector.load %arg8[%c0_79, %c0_80] : memref<8x128xf32, #tpu.memory_space<vmem>>, vector<8x128xf32>
      %241 = vector.shape_cast %240 : vector<8x128xf32> to vector<1x8x128xf32>
      %cst_81 = arith.constant dense<0.000000e+00> : vector<1xf32>
      %242 = vector.multi_reduction <add>, %241, %cst_81 [1, 2] : vector<1x8x128xf32> to vector<1xf32>
      %243 = vector.shape_cast %242 : vector<1xf32> to vector<1x1x1xf32>
      %244 = vector.extract %243[0, 0, 0] : f32 from vector<1x1x1xf32>
      %c0_i32_82 = arith.constant 0 : i32
      %245 = vector.broadcast %c0_i32_82 : i32 to vector<8x128xi32>
      %246 = arith.cmpi eq, %182, %245 : vector<8x128xi32>
      %c4_i32 = arith.constant 4 : i32
      %247 = vector.broadcast %c4_i32 : i32 to vector<8x128xi32>
      %248 = arith.cmpi eq, %181, %247 : vector<8x128xi32>
      %249 = arith.andi %246, %248 : vector<8x128xi1>
      %cst_83 = arith.constant 0.000000e+00 : f32
      %250 = vector.broadcast %244 : f32 to vector<8x128xf32>
      %251 = vector.broadcast %cst_83 : f32 to vector<8x128xf32>
      %252 = arith.select %249, %250, %251 : vector<8x128xi1>, vector<8x128xf32>
      %253 = arith.addf %239, %252 : vector<8x128xf32>
      %c0_84 = arith.constant 0 : index
      %c0_85 = arith.constant 0 : index
      %254 = vector.load %arg9[%c0_84, %c0_85] : memref<8x128xf32, #tpu.memory_space<vmem>>, vector<8x128xf32>
      %255 = vector.shape_cast %254 : vector<8x128xf32> to vector<1x8x128xf32>
      %cst_86 = arith.constant dense<0.000000e+00> : vector<1xf32>
      %256 = vector.multi_reduction <add>, %255, %cst_86 [1, 2] : vector<1x8x128xf32> to vector<1xf32>
      %257 = vector.shape_cast %256 : vector<1xf32> to vector<1x1x1xf32>
      %258 = vector.extract %257[0, 0, 0] : f32 from vector<1x1x1xf32>
      %c0_i32_87 = arith.constant 0 : i32
      %259 = vector.broadcast %c0_i32_87 : i32 to vector<8x128xi32>
      %260 = arith.cmpi eq, %182, %259 : vector<8x128xi32>
      %c5_i32 = arith.constant 5 : i32
      %261 = vector.broadcast %c5_i32 : i32 to vector<8x128xi32>
      %262 = arith.cmpi eq, %181, %261 : vector<8x128xi32>
      %263 = arith.andi %260, %262 : vector<8x128xi1>
      %cst_88 = arith.constant 0.000000e+00 : f32
      %264 = vector.broadcast %258 : f32 to vector<8x128xf32>
      %265 = vector.broadcast %cst_88 : f32 to vector<8x128xf32>
      %266 = arith.select %263, %264, %265 : vector<8x128xi1>, vector<8x128xf32>
      %267 = arith.addf %253, %266 : vector<8x128xf32>
      %c0_89 = arith.constant 0 : index
      %c0_90 = arith.constant 0 : index
      %268 = vector.load %arg10[%c0_89, %c0_90] : memref<8x128xf32, #tpu.memory_space<vmem>>, vector<8x128xf32>
      %269 = vector.shape_cast %268 : vector<8x128xf32> to vector<1x8x128xf32>
      %cst_91 = arith.constant dense<0.000000e+00> : vector<1xf32>
      %270 = vector.multi_reduction <add>, %269, %cst_91 [1, 2] : vector<1x8x128xf32> to vector<1xf32>
      %271 = vector.shape_cast %270 : vector<1xf32> to vector<1x1x1xf32>
      %272 = vector.extract %271[0, 0, 0] : f32 from vector<1x1x1xf32>
      %c0_i32_92 = arith.constant 0 : i32
      %273 = vector.broadcast %c0_i32_92 : i32 to vector<8x128xi32>
      %274 = arith.cmpi eq, %182, %273 : vector<8x128xi32>
      %c6_i32 = arith.constant 6 : i32
      %275 = vector.broadcast %c6_i32 : i32 to vector<8x128xi32>
      %276 = arith.cmpi eq, %181, %275 : vector<8x128xi32>
      %277 = arith.andi %274, %276 : vector<8x128xi1>
      %cst_93 = arith.constant 0.000000e+00 : f32
      %278 = vector.broadcast %272 : f32 to vector<8x128xf32>
      %279 = vector.broadcast %cst_93 : f32 to vector<8x128xf32>
      %280 = arith.select %277, %278, %279 : vector<8x128xi1>, vector<8x128xf32>
      %281 = arith.addf %267, %280 : vector<8x128xf32>
      %c0_94 = arith.constant 0 : index
      %c0_95 = arith.constant 0 : index
      %282 = vector.load %arg11[%c0_94, %c0_95] : memref<8x128xf32, #tpu.memory_space<vmem>>, vector<8x128xf32>
      %283 = vector.shape_cast %282 : vector<8x128xf32> to vector<1x8x128xf32>
      %cst_96 = arith.constant dense<0.000000e+00> : vector<1xf32>
      %284 = vector.multi_reduction <add>, %283, %cst_96 [1, 2] : vector<1x8x128xf32> to vector<1xf32>
      %285 = vector.shape_cast %284 : vector<1xf32> to vector<1x1x1xf32>
      %286 = vector.extract %285[0, 0, 0] : f32 from vector<1x1x1xf32>
      %c0_i32_97 = arith.constant 0 : i32
      %287 = vector.broadcast %c0_i32_97 : i32 to vector<8x128xi32>
      %288 = arith.cmpi eq, %182, %287 : vector<8x128xi32>
      %c7_i32 = arith.constant 7 : i32
      %289 = vector.broadcast %c7_i32 : i32 to vector<8x128xi32>
      %290 = arith.cmpi eq, %181, %289 : vector<8x128xi32>
      %291 = arith.andi %288, %290 : vector<8x128xi1>
      %cst_98 = arith.constant 0.000000e+00 : f32
      %292 = vector.broadcast %286 : f32 to vector<8x128xf32>
      %293 = vector.broadcast %cst_98 : f32 to vector<8x128xf32>
      %294 = arith.select %291, %292, %293 : vector<8x128xi1>, vector<8x128xf32>
      %295 = arith.addf %281, %294 : vector<8x128xf32>
      %c0_99 = arith.constant 0 : index
      %c0_100 = arith.constant 0 : index
      %296 = vector.load %arg3[%c0_99, %c0_100] : memref<8x128xf32, #tpu.memory_space<vmem>>, vector<8x128xf32>
      tpu.vector_store %arg3[%c0_99, %c0_100], %295 {strides = array<i32>} : memref<8x128xf32, #tpu.memory_space<vmem>>, vector<8x128xf32>,
    } else {
    }
    return
  }
  func.func @transform_0(%arg0: i32, %arg1: i32) -> (i32, i32) {
    %c1_i32 = arith.constant 1 : i32
    %0 = arith.muli %arg0, %c1_i32 : i32
    %1 = arith.addi %0, %arg1 : i32
    %c0_i32 = arith.constant 0 : i32
    %c0_i32_0 = arith.constant 0 : i32
    return %c0_i32, %1 : i32, i32
  }
  func.func @transform_1(%arg0: i32, %arg1: i32) -> (i32, i32) {
    %c0_i32 = arith.constant 0 : i32
    %c0_i32_0 = arith.constant 0 : i32
    return %arg0, %c0_i32 : i32, i32
  }
}

</mosaic_0001>

<bundles_post_ra>
// kernel: tpu_custom_call.1
= control target key start
LH: loop header
LB: loop body
LE: loop exit
PB: predicated region body
PF: predicated region fallthrough
CT: control target
= control target key end

     0   :  { %6 = vsyncpa [#allocation11], 0  ;;  %s1850_s0 = inlined_call_operand.hbm [shape: f32[48,1024], index: 0, kind: input, shape index: {}]   ;;  %s1851_s1 = inlined_call_operand.hbm [shape: f32[16,128], index: 1, kind: output, shape index: {}]  }
   0x1   :  { %8 = vsyncpa [#allocation11 + $0x1], 0 }
   0x2   :  { %9 = vsyncpa [#allocation12], 0 }
   0x3   :  { %11 = vsyncpa [#allocation12 + $0x1], 0  ;;  %s1145_s6 = smov 0   ;;  %s1147_s7 = smov 0  }
   0x4   :  { %s1149_s8 = smov 0   ;;  %s1151_s9 = smov 0  }
   0x5   :  { %s1153_s10 = smov 0   ;;  %s1155_s11 = smov 0  }
   0x6 LB: > { %s862_s12 = sadd.s32 4294967295, %s1128_s11   ;;  %s863_s13 = sadd.s32 4294967294, %s1128_s11   ;;  %s1128_s11 = sphi %s1155_s11, %s17_s11   ;;  %s1124_s10 = sphi %s1153_s10, %s1937_s10   ;;  %s1120_s9 = sphi %s1151_s9, %s1936_s9   ;;  %s1116_s8 = sphi %s1149_s8, %s1935_s8   ;;  %s1112_s7 = sphi %s1147_s7, %s1934_s7   ;;  %s1108_s6 = sphi %s1145_s6, %s1933_s6  }
   0x7   : > { %s29_s14 = sadd.s32 1, %s1124_s10  ;;  %s38_s15 = sadd.s32 1, %s1116_s8 }
   0x8   : > { %p31_p0 = scmp.ge.s32.totalorder %s29_s14, 2  ;;  %p45_p1 = scmp.ne.s32.totalorder %s1116_s8, %s1112_s7 }
   0x9   : > { %p46_p2 = scmp.eq.s32.totalorder %s1128_s11, 0  ;;  %p51_p3 = scmp.ne.s32.totalorder %s1112_s7, %s1108_s6 }
   0xa   : > { %s1939_s14 = smov (%p31_p0, %s29_s14), 0  ;;  %p52_p5 = scmp.eq.s32.totalorder %s862_s12, 0 }
   0xb   : > { %p1186_p4 = por %p46_p2, %p45_p1  ;;  %s35_s17 = ssub.s32 %s1124_s10, %s1939_s14 }
   0xc   : > { %p75_p6 = scmp.eq.s32.totalorder %s862_s12, 1  ;;  %p36_p7 = scmp.eq.s32.totalorder %s35_s17, 0 }
   0xd   : > { %p1192_p8 = por %p52_p5, %p51_p3  ;;  %p81_p10 = scmp.eq.s32.totalorder %s863_s13, 1 }
   0xe   : > { %p1196_p9 = por %p75_p6, %p45_p1  ;;  %p865_p12 = scmp.ge.s32.totalorder %s1128_s11, 2 }
   0xf   : > { %s1201_s20 = scalar_select %p36_p7, %s1116_s8, %s38_s15  }
  0x10   : > { %p1203_p11 = por %p81_p10, %p51_p3  ;;  %p921_p13 = scmp.lt.s32.totalorder %s1128_s11, 2 }
  0x11   : > { %s101_s22 = sand.u32 1, %s1116_s8   ;;  %s890_s24 = sshll.u32 %s1124_s10, 5 }
  0x12   : > { %s891_s23 = smul.u32 192, %s101_s22  ;;  %p914_p0 = pnand %p921_p13, %p1186_p4 }
  0x13   : > { %s111_s27 = scalar_lea.hbm %s1850_s0, %s890_s24  ;;  %s102_s2 = scalar_lea.sflag [#allocation11], %s101_s22 }
  0x14   : > { %s112_s28 = sshll.u32 %s111_s27, 4  ;;  %s105_s29 = scalar_lea.vmem [#allocation10], %s891_s23  ;;  %s113_s28 = int_to_ptr.hbm [resolvable:$true] %s112_s28 }
  0x15   : > { %s114_s30 = sshll.u32 %s105_s29, 4  ;;  %s1130_s3 = smov 1024   ;;  %s115_s30 = int_to_ptr.vmem [resolvable:$true] %s114_s30 }
  0x16   : > { %s1131_s4 = smov 512   ;;  %s1132_s5 = smov 32  }
  0x17   : > { %916 = dma.hbm_to_vmem [thread:$0]  (!%p914_p0), %s113_s28, 3072, %s115_s30, %s102_s2, %s1130_s3, %s1131_s4, %s1132_s5  }
  0x18   : > { %p868_p1 = scmp.ge.s32.totalorder %s1128_s11, 1  ;;  %p122_p2 = scmp.lt.s32.totalorder %s1128_s11, 3 }
  0x1a   : > { %p123_p3 = pnand %p868_p1, %p122_p2 }
  0x1b   : > { %s1219_s12 = sand.u32 (!%p123_p3), 1, %s1112_s7  }
  0x1c   : > { %126 = sbr.rel (%p123_p3) target bundleno = 331 (0x14b), region = 24  ;;  %s129_s15 = scalar_lea.sflag (!%p123_p3), [#allocation11], %s1219_s12 }
  0x1d   : > { %s892_s13 = smul.u32 (!%p123_p3), 192, %s1219_s12 }
  0x1f   : > { %s1223_s16 = scalar_lea.vmem (!%p123_p3), [#allocation10], %s892_s13 }
  0x21   : > { %1099 = dma.done.wait (%p1192_p8), %s129_s15, 3072  }
  0x22   : > { %1101 = vsyncadd (%p1192_p8), %s129_s15, 4294964224  ;;  %v1230_v0 = vld [vmem:[%s1223_s16] sm:$0xff]  ;;  %v1233_v1 = vld [vmem:[%s1223_s16 + $0x8] sm:$0xff]  ;;  %s869_s25 = sshll.u32 %s1219_s12, 3  ;;  %s887_s26 = sshll.u32 %s1120_s9, 3 }
  0x23   : > { %v1236_v2 = vld [vmem:[%s1223_s16 + $0x10] sm:$0xff]  ;;  %v1239_v3 = vld [vmem:[%s1223_s16 + $0x18] sm:$0xff]  ;;  %v1242_v4 = vld [vmem:[%s1223_s16 + $0x20] sm:$0xff]  ;;  %v258_v48 = vmul.f32 %v1230_v0, %v1230_v0  ;;  %v259_v52 = vmul.f32 %v1233_v1, %v1233_v1  ;;  %s778_s2 = scalar_lea.hbm %s1851_s1, %s887_s26  ;;  %s151_s9 = scalar_lea.vmem [#allocation13], %s869_s25 }
  0x24   : > { %v1245_v5 = vld [vmem:[%s1223_s16 + $0x28] sm:$0xff]  ;;  %v1248_v6 = vld [vmem:[%s1223_s16 + $0x30] sm:$0xff]  ;;  %v1251_v7 = vld [vmem:[%s1223_s16 + $0x38] sm:$0xff]  ;;  %v262_v51 = vmul.f32 %v1242_v4, %v1242_v4  ;;  %v260_v53 = vmul.f32 %v1236_v2, %v1236_v2  ;;  %v261_v56 = vmul.f32 %v1239_v3, %v1239_v3  ;;  %s780_s3 = sshll.u32 %s151_s9, 4  ;;  %s782_s5 = sshll.u32 %s778_s2, 4  ;;  %s781_s3 = int_to_ptr.vmem [resolvable:$true] %s780_s3  ;;  %s783_s5 = int_to_ptr.hbm [resolvable:$true] %s782_s5 }
  0x25   : > { %v1254_v8 = vld [vmem:[%s1223_s16 + $0x40] sm:$0xff]  ;;  %v1257_v9 = vld [vmem:[%s1223_s16 + $0x48] sm:$0xff]  ;;  %v1260_v10 = vld [vmem:[%s1223_s16 + $0x50] sm:$0xff]  ;;  %v263_v57 = vmul.f32 %v1245_v5, %v1245_v5  ;;  %v264_v59 = vmul.f32 %v1248_v6, %v1248_v6  ;;  %v265_v60 = vmul.f32 %v1251_v7, %v1251_v7  ;;  %s768_s13 = scalar_lea.sflag [#allocation12], %s1219_s12  ;;  %s1060_s15 = sshra.s32 %s783_s5, 4  ;;  %s1061_s15 = int_to_ptr.hbm [resolvable:$true] %s1060_s15 }
  0x26   : > { %v1263_v11 = vld [vmem:[%s1223_s16 + $0x58] sm:$0xff]  ;;  %v190_v12 = vsub.f32 %v1230_v0, %v1254_v8  ;;  %v1268_v13 = vld [vmem:[%s1223_s16 + $0x60] sm:$0xff]  ;;  %v1271_v14 = vld [vmem:[%s1223_s16 + $0x68] sm:$0xff]  ;;  %v191_v16 = vsub.f32 %v1233_v1, %v1257_v9  ;;  %v192_v17 = vsub.f32 %v1236_v2, %v1260_v10  ;;  %v270_v61 = vmul.f32 %v1254_v8, %v1254_v8  ;;  %p1067_p7 = scmp.lt.s32.totalorder %s1061_s15, %s1851_s1 }
  0x27   : > { %v1274_v15 = vld [vmem:[%s1223_s16 + $0x70] sm:$0xff]  ;;  %v193_v18 = vsub.f32 %v1239_v3, %v1263_v11  ;;  %v1283_v19 = vld [vmem:[%s1223_s16 + $0x78] sm:$0xff]  ;;  %v194_v20 = vsub.f32 %v1242_v4, %v1268_v13  ;;  %v195_v21 = vsub.f32 %v1245_v5, %v1271_v14  ;;  %v183_v24 = vld [vmem:[%s1223_s16 + $0x88] sm:$0xff] }
  0x28   : > { %v196_v22 = vsub.f32 %v1248_v6, %v1274_v15  ;;  %v198_v23 = vmul.f32 %v190_v12, %v190_v12  ;;  %v197_v25 = vsub.f32 %v1251_v7, %v1283_v19  ;;  %v199_v26 = vmul.f32 %v191_v16, %v191_v16  ;;  %v182_v29 = vld [vmem:[%s1223_s16 + $0x80] sm:$0xff]  ;;  %v187_v34 = vld [vmem:[%s1223_s16 + $0xa8] sm:$0xff]  ;;  %v184_v36 = vld [vmem:[%s1223_s16 + $0x90] sm:$0xff] }
  0x29   : > { %v200_v27 = vmul.f32 %v192_v17, %v192_v17  ;;  %v201_v28 = vmul.f32 %v193_v18, %v193_v18  ;;  %v186_v30 = vld [vmem:[%s1223_s16 + $0xa0] sm:$0xff]  ;;  %v202_v31 = vmul.f32 %v194_v20, %v194_v20  ;;  %v203_v32 = vmul.f32 %v195_v21, %v195_v21  ;;  %v188_v37 = vld [vmem:[%s1223_s16 + $0xb0] sm:$0xff]  ;;  %v185_v44 = vld [vmem:[%s1223_s16 + $0x98] sm:$0xff] }
  0x2a   : > { %v204_v33 = vmul.f32 %v196_v22, %v196_v22  ;;  %v205_v35 = vmul.f32 %v197_v25, %v197_v25  ;;  %v455_v38 = vsub.f32 %v183_v24, %v187_v34  ;;  %v454_v42 = vsub.f32 %v182_v29, %v186_v30  ;;  %v189_v45 = vld [vmem:[%s1223_s16 + $0xb8] sm:$0xff]  ;;  %s1062_s16 = scalar_lea.hbm %s1061_s15, 8 }
  0x2b   : > { %v1299_v39 = vadd.f32 %v202_v31, %v198_v23  ;;  %v1301_v40 = vadd.f32 %v203_v32, %v199_v26  ;;  %v456_v46 = vsub.f32 %v184_v36, %v188_v37  ;;  %v457_v49 = vsub.f32 %v185_v44, %v189_v45  ;;  %p1063_p4 = scmp.ne.s32.totalorder %s1061_s15, %s1062_s16 }
  0x2c   : > { %v1303_v41 = vadd.f32 %v204_v33, %v200_v27  ;;  %v1305_v43 = vadd.f32 %v205_v35, %v201_v28  ;;  %v459_v47 = vand.u32 2147483647, %v455_v38  ;;  %v458_v50 = vand.u32 2147483647, %v454_v42 }
  0x2d   : > { %976 = vrsqrt.f32 %v1299_v39  ;;  %v460_v54 = vand.u32 2147483647, %v456_v46  ;;  %v220_v63 = vand.u32 2147483648, %v1299_v39  ;;  %v1334_v12 = vand.u32 2147483647, %v457_v49  ;;  %p1064_p5 = pnand %p1063_p4, %p1196_p9 }
  0x2e   : > { %978 = vrsqrt.f32 %v1301_v40  ;;  %v615_v55 = vadd.f32 %v459_v47, %v458_v50  ;;  %v1325_v58 = vmul.f32 0.31830987, %v459_v47  ;;  %v266_v17 = vadd.f32 %v262_v51, %v258_v48 }
  0x2f   : > { %980 = vrsqrt.f32 %v1303_v41  ;;  %v232_v21 = vand.u32 2147483648, %v1301_v40  ;;  %v244_v22 = vand.u32 2147483648, %v1303_v41  ;;  %v256_v23 = vand.u32 2147483648, %v1305_v43  ;;  %p1065_p6 = pneg %p1064_p5 }
  0x30   : > { %982 = vrsqrt.f32 %v1305_v43  ;;  %v616_v16 = vadd.f32 %v615_v55, %v460_v54  ;;  %vm217_vm0 = vcmp.eq.f32.partialorder %v1299_v39, inf  ;;  %v1342_v26 = vmul.f32 0.31830987, %v460_v54 }
  0x31   : > { %v1344_v27 = vmul.f32 0.31830987, %v458_v50  ;;  %v267_v28 = vadd.f32 %v263_v57, %v259_v52  ;;  %vm219_vm1 = vcmp.eq.f32.partialorder %v1299_v39, 0.0  ;;  %vm229_vm2 = vcmp.eq.f32.partialorder %v1301_v40, inf }
  0x32   : > { %v467_v32 = vsub.f32 0.0, %v1325_v58  ;;  %v617_v33 = vadd.f32 %v616_v16, %v1334_v12  ;;  %vm231_vm3 = vcmp.eq.f32.partialorder %v1301_v40, 0.0  ;;  %vm241_vm4 = vcmp.eq.f32.partialorder %v1303_v41, inf }
  0x33   : > { %v977_v62 = vpop.eup %976  ;;  %v268_v36 = vadd.f32 %v264_v59, %v260_v53  ;;  %v269_v37 = vadd.f32 %v265_v60, %v261_v56  ;;  %vm243_vm5 = vcmp.eq.f32.partialorder %v1303_v41, 0.0  ;;  %vm253_vm6 = vcmp.eq.f32.partialorder %v1305_v43, inf }
  0x34   : > { %v979_v18 = vpop.eup %978  ;;  %v211_v20 = vmul.f32 %v977_v62, %v1299_v39  ;;  %707 = vadd.xlane.f32.xlu2 %v617_v33  ;;  %v271_v44 = vmul.f32 %v1257_v9, %v1257_v9  ;;  %v274_v45 = vmul.f32 %v1268_v13, %v1268_v13  ;;  %vm255_vm7 = vcmp.eq.f32.partialorder %v1305_v43, 0.0 }
  0x35   : > { %v981_v24 = vpop.eup %980  ;;  %v223_v25 = vmul.f32 %v979_v18, %v1301_v40  ;;  %v272_v48 = vmul.f32 %v1260_v10, %v1260_v10  ;;  %v275_v49 = vmul.f32 %v1271_v14, %v1271_v14  ;;  %v472_v52 = vmul.f32 1.442695, %v467_v32 }
  0x36   : > { %v983_v29 = vpop.eup %982  ;;  %v212_v30 = vmul.f32 %v977_v62, %v211_v20  ;;  %v235_v31 = vmul.f32 %v981_v24, %v1303_v41  ;;  %v276_v53 = vmul.f32 %v1274_v15, %v1274_v15  ;;  %v273_v56 = vmul.f32 %v1263_v11, %v1263_v11 }
  0x37   : > { %v224_v34 = vmul.f32 %v979_v18, %v223_v25  ;;  %v247_v35 = vmul.f32 %v983_v29, %v1305_v43  ;;  %v277_v57 = vmul.f32 %v1283_v19, %v1283_v19  ;;  %v278_v16 = vadd.f32 %v274_v45, %v270_v61 }
  0x38   : > { %v213_v38 = vmul.f32 0.5, %v212_v30  ;;  %v236_v42 = vmul.f32 %v981_v24, %v235_v31  ;;  %v279_v20 = vadd.f32 %v275_v49, %v271_v44  ;;  %v280_v31 = vadd.f32 %v276_v53, %v272_v48 }
  0x39   : > { %v225_v46 = vmul.f32 0.5, %v224_v34  ;;  %v248_v47 = vmul.f32 %v983_v29, %v247_v35  ;;  %vm282_vm8 = vcmp.eq.f32.partialorder %v266_v17, 0.0  ;;  %vm283_vm9 = vcmp.eq.f32.partialorder %v267_v28, 0.0 }
  0x3a   : > { %v214_v50 = vsub.f32 1.5, %v213_v38  ;;  %v237_v51 = vmul.f32 0.5, %v236_v42  ;;  %vm284_vm10 = vcmp.eq.f32.partialorder %v268_v36, 0.0  ;;  %vm285_vm11 = vcmp.eq.f32.partialorder %v269_v37, 0.0 }
  0x3b   : > { %v226_v54 = vsub.f32 1.5, %v225_v46  ;;  %v249_v55 = vmul.f32 0.5, %v248_v47  ;;  %v1373_v38 = vsel %vm282_vm8, 1.0, %v266_v17  ;;  %v1379_v42 = vsel %vm283_vm9, 1.0, %v267_v28 }
  0x3c   : > { %v215_v59 = vmul.f32 %v977_v62, %v214_v50  ;;  %v238_v60 = vsub.f32 1.5, %v237_v51  ;;  %v1389_v44 = vsel %vm284_vm10, 1.0, %v268_v36  ;;  %v1398_v46 = vsel %vm285_vm11, 1.0, %v269_v37 }
  0x3d   : > { %v227_v25 = vmul.f32 %v979_v18, %v226_v54  ;;  %v250_v30 = vsub.f32 1.5, %v249_v55  ;;  %v281_v18 = vadd.f32 %v277_v57, %v273_v56  ;;  %984 = vrsqrt.f32 %v1373_v38 }
  0x3e   : > { %v216_v32 = vmul.f32 %v215_v59, %v1299_v39  ;;  %v239_v33 = vmul.f32 %v981_v24, %v238_v60  ;;  %986 = vrsqrt.f32 %v1379_v42  ;;  %v1414_v37 = vmul.f32 0.31830987, %v1334_v12 }
  0x3f   : > { %v228_v34 = vmul.f32 %v227_v25, %v1301_v40  ;;  %v251_v35 = vmul.f32 %v983_v29, %v250_v30  ;;  %v468_v48 = vsub.f32 0.0, %v1342_v26  ;;  %988 = vrsqrt.f32 %v1389_v44 }
  0x40   : > { %v218_v61 = vsel %vm217_vm0, %v1299_v39, %v216_v32  ;;  %v240_v62 = vmul.f32 %v239_v33, %v1303_v41  ;;  %v466_v49 = vsub.f32 0.0, %v1344_v27  ;;  %990 = vrsqrt.f32 %v1398_v46 }
  0x41   : > { %v221_v24 = vsel %vm219_vm1, %v220_v63, %v218_v61  ;;  %v230_v29 = vsel %vm229_vm2, %v1301_v40, %v228_v34  ;;  %v252_v17 = vmul.f32 %v251_v35, %v1305_v43  ;;  %vm330_vm12 = vcmp.eq.f32.partialorder %v278_v16, 0.0 }
  0x42   : > { %v233_v45 = vsel %vm231_vm3, %v232_v21, %v230_v29  ;;  %v242_v28 = vsel %vm241_vm4, %v1303_v41, %v240_v62  ;;  %vm331_vm13 = vcmp.eq.f32.partialorder %v279_v20, 0.0  ;;  %vm332_vm14 = vcmp.eq.f32.partialorder %v280_v31, 0.0 }
  0x43   : > { %v245_v63 = vsel %vm243_vm5, %v244_v22, %v242_v28  ;;  %v254_v36 = vsel %vm253_vm6, %v1305_v43, %v252_v17  ;;  %v591_v47 = vadd.f32 %v233_v45, %v221_v24  ;;  %vm333_vm15 = vcmp.eq.f32.partialorder %v281_v18, 0.0  ;;  %v985_v53 = vpop.eup %984 }
  0x44   : > { %v257_v21 = vsel %vm255_vm7, %v256_v23, %v254_v36  ;;  %v1420_v50 = vsel %vm330_vm12, 1.0, %v278_v16  ;;  %992 = vpow2.f32 %v472_v52  ;;  %v1422_v23 = vsel %vm331_vm13, 1.0, %v279_v20  ;;  %v987_v57 = vpop.eup %986 }
  0x45   : > { %v592_v22 = vadd.f32 %v591_v47, %v245_v63  ;;  %v1424_v12 = vsel %vm332_vm14, 1.0, %v280_v31  ;;  %v469_v54 = vsub.f32 0.0, %v1414_v37  ;;  %v1427_v55 = vmul.f32 1.442695, %v468_v48  ;;  %v989_v52 = vpop.eup %988 }
  0x46   : > { %v1429_v56 = vsel %vm333_vm15, 1.0, %v281_v18  ;;  %994 = vrsqrt.f32 %v1420_v50  ;;  %v1432_v59 = vmul.f32 1.442695, %v466_v49  ;;  %v291_v60 = vmul.f32 %v985_v53, %v1373_v38  ;;  %v991_v20 = vpop.eup %990 }
  0x47   : > { %v593_v51 = vadd.f32 %v592_v22, %v257_v21  ;;  %vm296_vm0 = vweird.f32 %v1373_v38  ;;  %996 = vrsqrt.f32 %v1422_v23  ;;  %v301_v16 = vmul.f32 %v987_v57, %v1379_v42 }
  0x48   : > { %vm306_vm1 = vweird.f32 %v1379_v42  ;;  %vm316_vm2 = vweird.f32 %v1389_v44  ;;  %998 = vrsqrt.f32 %v1424_v12  ;;  %v292_v25 = vmul.f32 %v985_v53, %v291_v60 }
  0x49   : > { %646 = vadd.xlane.f32.xlu0 %v593_v51  ;;  %v311_v30 = vmul.f32 %v989_v52, %v1389_v44  ;;  %vm326_vm3 = vweird.f32 %v1398_v46  ;;  %1000 = vrsqrt.f32 %v1429_v56  ;;  %v302_v31 = vmul.f32 %v987_v57, %v301_v16 }
  0x4a   : > { %v321_v32 = vmul.f32 %v991_v20, %v1398_v46  ;;  %vm344_vm4 = vweird.f32 %v1420_v50  ;;  %vm354_vm5 = vweird.f32 %v1422_v23  ;;  %v1447_v33 = vpop.eup %992  ;;  %v293_v34 = vmul.f32 0.5, %v292_v25 }
  0x4b   : > { %vm297_vm6 = vweird.f32 %v985_v53  ;;  %v312_v35 = vmul.f32 %v989_v52, %v311_v30  ;;  %vm364_vm7 = vweird.f32 %v1424_v12  ;;  %v303_v62 = vmul.f32 0.5, %v302_v31 }
  0x4c   : > { %v995_v61 = vpop.eup %994  ;;  %vm307_vm8 = vweird.f32 %v987_v57  ;;  %vm317_vm9 = vweird.f32 %v989_v52  ;;  %v322_v18 = vmul.f32 %v991_v20, %v321_v32  ;;  %v294_v29 = vsub.f32 1.5, %v293_v34  ;;  %vm1453_vm11 = vmor %vm296_vm0, %vm297_vm6 }
  0x4d   : > { %v997_v24 = vpop.eup %996  ;;  %v313_v17 = vmul.f32 0.5, %v312_v35  ;;  %vm327_vm10 = vweird.f32 %v991_v20  ;;  %v339_v45 = vmul.f32 %v995_v61, %v1420_v50  ;;  %v304_v36 = vsub.f32 1.5, %v303_v62  ;;  %vm308_vm14 = vmor %vm306_vm1, %vm307_vm8 }
  0x4e   : > { %v999_v28 = vpop.eup %998  ;;  %v323_v47 = vmul.f32 0.5, %v322_v18  ;;  %vm345_vm12 = vweird.f32 %v995_v61  ;;  %v349_v21 = vmul.f32 %v997_v24, %v1422_v23  ;;  %vm374_vm13 = vweird.f32 %v1429_v56  ;;  %vm318_vm15 = vmor %vm316_vm2, %vm317_vm9 }
  0x4f   : > { %v1001_v48 = vpop.eup %1000  ;;  %v295_v22 = vmul.f32 %v985_v53, %v294_v29  ;;  %v314_v49 = vsub.f32 1.5, %v313_v17  ;;  %v340_v51 = vmul.f32 %v995_v61, %v339_v45  ;;  %v359_v38 = vmul.f32 %v999_v28, %v1424_v12  ;;  %vm328_vm1 = vmor %vm326_vm3, %vm327_vm10 }
  0x50   : > { %v305_v60 = vmul.f32 %v987_v57, %v304_v36  ;;  %v324_v16 = vsub.f32 1.5, %v323_v47  ;;  %v350_v25 = vmul.f32 %v997_v24, %v349_v21  ;;  %vm355_vm0 = vweird.f32 %v997_v24  ;;  %vm346_vm6 = vmor %vm344_vm4, %vm345_vm12 }
  0x51   : > { %v299_v30 = vsel %vm1453_vm11, %v985_v53, %v295_v22  ;;  %v315_v31 = vmul.f32 %v989_v52, %v314_v49  ;;  %v341_v42 = vmul.f32 0.5, %v340_v51  ;;  %v360_v32 = vmul.f32 %v999_v28, %v359_v38  ;;  %vm356_vm3 = vmor %vm354_vm5, %vm355_vm0 }
  0x52   : > { %v309_v34 = vsel %vm308_vm14, %v987_v57, %v305_v60  ;;  %v325_v35 = vmul.f32 %v991_v20, %v324_v16  ;;  %v351_v62 = vmul.f32 0.5, %v350_v25  ;;  %v369_v18 = vmul.f32 %v1001_v48, %v1429_v56 }
  0x53   : > { %v319_v44 = vsel %vm318_vm15, %v989_v52, %v315_v31  ;;  %v342_v29 = vsub.f32 1.5, %v341_v42  ;;  %v361_v17 = vmul.f32 0.5, %v360_v32  ;;  %vm365_vm2 = vweird.f32 %v999_v28 }
  0x54   : > { %v329_v45 = vsel %vm328_vm1, %v991_v20, %v325_v35  ;;  %v352_v53 = vsub.f32 1.5, %v351_v62  ;;  %v370_v63 = vmul.f32 %v1001_v48, %v369_v18  ;;  %vm375_vm8 = vweird.f32 %v1001_v48  ;;  %vm366_vm9 = vmor %vm364_vm7, %vm365_vm2 }
  0x55   : > { %v343_v46 = vmul.f32 %v995_v61, %v342_v29  ;;  %v362_v57 = vsub.f32 1.5, %v361_v17  ;;  %v378_v36 = vmul.f32 %v299_v30, %v1230_v0  ;;  %v379_v52 = vmul.f32 %v309_v34, %v1233_v1  ;;  %vm376_vm4 = vmor %vm374_vm13, %vm375_vm8 }
  0x56   : > { %v353_v47 = vmul.f32 %v997_v24, %v352_v53  ;;  %v371_v20 = vmul.f32 0.5, %v370_v63  ;;  %v380_v50 = vmul.f32 %v319_v44, %v1236_v2  ;;  %v381_v21 = vmul.f32 %v329_v45, %v1239_v3 }
  0x57   : > { %v347_v22 = vsel %vm346_vm6, %v995_v61, %v343_v46  ;;  %v363_v49 = vmul.f32 %v999_v28, %v362_v57  ;;  %v390_v51 = vmul.f32 %v299_v30, %v1242_v4  ;;  %v391_v23 = vmul.f32 %v309_v34, %v1245_v5 }
  0x58   : > { %v357_v38 = vsel %vm356_vm3, %v997_v24, %v353_v47  ;;  %v372_v60 = vsub.f32 1.5, %v371_v20  ;;  %v382_v16 = vmul.f32 %v347_v22, %v1254_v8  ;;  %v392_v25 = vmul.f32 %v319_v44, %v1248_v6 }
  0x59   : > { %v367_v31 = vsel %vm366_vm9, %v999_v28, %v363_v49  ;;  %v383_v12 = vmul.f32 %v357_v38, %v1257_v9  ;;  %v394_v61 = vmul.f32 %v347_v22, %v1268_v13  ;;  %v395_v42 = vmul.f32 %v357_v38, %v1271_v14 }
  0x5a   : > { %v373_v30 = vmul.f32 %v1001_v48, %v372_v60  ;;  %v384_v32 = vmul.f32 %v367_v31, %v1260_v10  ;;  %v386_v24 = vsub.f32 %v378_v36, %v382_v16  ;;  %v396_v34 = vmul.f32 %v367_v31, %v1274_v15 }
  0x5b   : > { %v387_v35 = vsub.f32 %v379_v52, %v383_v12  ;;  %v393_v62 = vmul.f32 %v329_v45, %v1251_v7  ;;  %v398_v28 = vsub.f32 %v390_v51, %v394_v61  ;;  %v399_v18 = vsub.f32 %v391_v23, %v395_v42 }
  0x5c   : > { %v377_v44 = vsel %vm376_vm4, %v1001_v48, %v373_v30  ;;  %v388_v56 = vsub.f32 %v380_v50, %v384_v32  ;;  %v400_v29 = vsub.f32 %v392_v25, %v396_v34  ;;  %v402_v17 = vand.u32 2147483647, %v386_v24 }
  0x5d   : > { %v385_v53 = vmul.f32 %v377_v44, %v1263_v11  ;;  %v397_v63 = vmul.f32 %v377_v44, %v1283_v19  ;;  %v403_v46 = vand.u32 2147483647, %v387_v35  ;;  %v406_v57 = vand.u32 2147483647, %v398_v28 }
  0x5e   : > { %v404_v47 = vand.u32 2147483647, %v388_v56  ;;  %v407_v20 = vand.u32 2147483647, %v399_v18  ;;  %v408_v36 = vand.u32 2147483647, %v400_v29  ;;  %v597_v52 = vadd.f32 %v1301_v40, %v1299_v39 }
  0x5f   : > { %v389_v22 = vsub.f32 %v381_v21, %v385_v53  ;;  %v401_v45 = vsub.f32 %v393_v62, %v397_v63  ;;  %vm1501_vm5 = vcmp.lt.f32.partialorder %v402_v17, 1.0  ;;  %vm1505_vm7 = vcmp.lt.f32.partialorder %v403_v46, 1.0 }
  0x60   : > { %vm1509_vm10 = vcmp.lt.f32.partialorder %v404_v47, 1.0  ;;  %v414_v51 = vmul.f32 0.5, %v386_v24  ;;  %v415_v23 = vmul.f32 0.5, %v387_v35  ;;  %v416_v38 = vmul.f32 0.5, %v388_v56 }
  0x61   : > { %v405_v60 = vand.u32 2147483647, %v389_v22  ;;  %v409_v16 = vand.u32 2147483647, %v401_v45  ;;  %v417_v39 = vmul.f32 0.5, %v389_v22  ;;  %v870_v40 = vadd.f32 -0.5, %v402_v17 }
  0x62   : > { %v418_v21 = vmul.f32 %v414_v51, %v386_v24  ;;  %v419_v25 = vmul.f32 %v415_v23, %v387_v35  ;;  %v420_v31 = vmul.f32 %v416_v38, %v388_v56  ;;  %v871_v12 = vadd.f32 -0.5, %v403_v46 }
  0x63   : > { %vm1513_vm11 = vcmp.lt.f32.partialorder %v405_v60, 1.0  ;;  %v421_v42 = vmul.f32 %v417_v39, %v389_v22  ;;  %v872_v30 = vadd.f32 -0.5, %v404_v47  ;;  %v598_v32 = vadd.f32 %v597_v52, %v1303_v41 }
  0x64   : > { %v873_v34 = vadd.f32 -0.5, %v405_v60  ;;  %v426_v62 = vsel %vm1501_vm5, %v418_v21, %v870_v40  ;;  %v427_v44 = vsel %vm1505_vm7, %v419_v25, %v871_v12  ;;  %vm1522_vm12 = vcmp.lt.f32.partialorder %v406_v57, 1.0 }
  0x65   : > { %v428_v35 = vsel %vm1509_vm10, %v420_v31, %v872_v30  ;;  %vm1528_vm13 = vcmp.lt.f32.partialorder %v407_v20, 1.0  ;;  %vm1532_vm14 = vcmp.lt.f32.partialorder %v408_v36, 1.0  ;;  %vm1536_vm15 = vcmp.lt.f32.partialorder %v409_v16, 1.0 }
  0x66   : > { %v434_v53 = vmul.f32 0.5, %v398_v28  ;;  %v435_v63 = vmul.f32 0.5, %v399_v18  ;;  %v436_v46 = vmul.f32 0.5, %v400_v29  ;;  %v437_v47 = vmul.f32 0.5, %v401_v45 }
  0x67   : > { %v874_v52 = vadd.f32 -0.5, %v406_v57  ;;  %v875_v22 = vadd.f32 -0.5, %v407_v20  ;;  %v876_v49 = vadd.f32 -0.5, %v408_v36  ;;  %v877_v48 = vadd.f32 -0.5, %v409_v16 }
  0x68   : > { %v438_v50 = vmul.f32 %v434_v53, %v398_v28  ;;  %v439_v51 = vmul.f32 %v435_v63, %v399_v18  ;;  %v440_v23 = vmul.f32 %v436_v46, %v400_v29  ;;  %v441_v38 = vmul.f32 %v437_v47, %v401_v45 }
  0x69   : > { %v476_v60 = vmul.f32 1.442695, %v469_v54  ;;  %1002 = vpow2.f32 %v1432_v59  ;;  %v429_v39 = vsel %vm1513_vm11, %v421_v42, %v873_v34  ;;  %v599_v40 = vadd.f32 %v598_v32, %v1305_v43 }
  0x6a   : > { %v446_v57 = vsel %vm1522_vm12, %v438_v50, %v874_v52  ;;  %v447_v20 = vsel %vm1528_vm13, %v439_v51, %v875_v22  ;;  %v448_v28 = vsel %vm1532_vm14, %v440_v23, %v876_v49  ;;  %v449_v18 = vsel %vm1536_vm15, %v441_v38, %v877_v48 }
  0x6b   : > { %v450_v54 = vadd.f32 %v446_v57, %v426_v62  ;;  %v451_v29 = vadd.f32 %v447_v20, %v427_v44  ;;  %v452_v59 = vadd.f32 %v448_v28, %v428_v35  ;;  %662 = vadd.xlane.f32.xlu0 %v599_v40  ;;  %vm522_vm0 = vcmp.eq.f32.partialorder %v1230_v0, 0.0 }
  0x6c   : > { %1004 = vpow2.f32 %v1427_v55  ;;  %vm523_vm1 = vcmp.eq.f32.partialorder %v1233_v1, 0.0  ;;  %vm526_vm2 = vcmp.eq.f32.partialorder %v1254_v8, 0.0  ;;  %vm527_vm6 = vcmp.eq.f32.partialorder %v1257_v9, 0.0 }
  0x6d   : > { %v453_v43 = vadd.f32 %v449_v18, %v429_v39  ;;  %v603_v36 = vadd.f32 %v451_v29, %v450_v54  ;;  %vm524_vm8 = vcmp.eq.f32.partialorder %v1236_v2, 0.0  ;;  %vm528_vm3 = vcmp.eq.f32.partialorder %v1260_v10, 0.0  ;;  %vm1563_vm5 = vmand %vm522_vm0, %vm526_vm2 }
  0x6e   : > { %vm525_vm9 = vcmp.eq.f32.partialorder %v1239_v3, 0.0  ;;  %vm529_vm4 = vcmp.eq.f32.partialorder %v1263_v11, 0.0  ;;  %1006 = vpow2.f32 %v476_v60  ;;  %vm1569_vm7 = vmand %vm523_vm1, %vm527_vm6  ;;  %vm534_vm10 = vcmp.eq.f32.partialorder %v1242_v4, 0.0 }
  0x6f   : > { %v1567_v55 = vpop.eup %1002  ;;  %v604_v16 = vadd.f32 %v603_v36, %v452_v59  ;;  %vm538_vm11 = vcmp.eq.f32.partialorder %v1268_v13, 0.0  ;;  %vm1575_vm12 = vmand %vm524_vm8, %vm528_vm3  ;;  %vm535_vm13 = vcmp.eq.f32.partialorder %v1245_v5, 0.0  ;;  %vm539_vm14 = vcmp.eq.f32.partialorder %v1271_v14, 0.0 }
  0x70   : > { %vm1581_vm15 = vmand %vm525_vm9, %vm529_vm4  ;;  %vm536_vm0 = vcmp.eq.f32.partialorder %v1248_v6, 0.0  ;;  %vm540_vm1 = vcmp.eq.f32.partialorder %v1274_v15, 0.0  ;;  %vm537_vm2 = vcmp.eq.f32.partialorder %v1251_v7, 0.0  ;;  %vm541_vm6 = vcmp.eq.f32.partialorder %v1283_v19, 0.0 }
  0x71   : > { %v605_v31 = vadd.f32 %v604_v16, %v453_v43  ;;  %vm1591_vm8 = vmand %vm534_vm10, %vm538_vm11  ;;  %v546_v30 = vmul.f32 %v1254_v8, %v1230_v0  ;;  %v547_v34 = vmul.f32 %v1257_v9, %v1233_v1  ;;  %v478_v44 = vadd.f32 1.0, %v1567_v55 }
  0x72   : > { %v1587_v61 = vpop.eup %1004  ;;  %vm1597_vm3 = vmand %vm535_vm13, %vm539_vm14  ;;  %v481_v24 = vmul.f32 -0.5, %v1567_v55  ;;  %v548_v56 = vmul.f32 %v1260_v10, %v1236_v2  ;;  %v549_v9 = vmul.f32 %v1263_v11, %v1239_v3  ;;  %v487_v41 = vadd.f32 1.0, %v1447_v33 }
  0x73   : > { %677 = vadd.xlane.f32.xlu1 %v605_v31  ;;  %vm1603_vm9 = vmand %vm536_vm0, %vm540_vm1  ;;  %v490_v17 = vmul.f32 -0.5, %v1447_v33  ;;  %vm550_vm10 = vcmp.le.f32.partialorder %v546_v30, 0.0  ;;  %vm1133_vm11 = vmmov 1   ;;  %v562_v63 = vmul.f32 %v1268_v13, %v1242_v4 }
  0x74   : > { %v1609_v35 = vpop.eup %1006  ;;  %vm1611_vm4 = vmand %vm537_vm2, %vm541_vm6  ;;  %1008 = vlog2.f32 %v478_v44  ;;  %v496_v10 = vadd.f32 1.0, %v1587_v61  ;;  %vm551_vm14 = vcmp.le.f32.partialorder %v547_v34, 0.0  ;;  %v482_v46 = vadd.f32 1.0, %v481_v24 }
  0x75   : > { %vm1624_vm13 = vmxor %vm1563_vm5, %vm1133_vm11  ;;  %1010 = vlog2.f32 %v487_v41  ;;  %v499_v47 = vmul.f32 -0.5, %v1587_v61  ;;  %v484_v52 = vand.u32 2147483647, %v1567_v55  ;;  %v491_v22 = vadd.f32 1.0, %v490_v17 }
  0x76   : > { %vm1634_vm0 = vmxor %vm1569_vm7, %vm1133_vm11  ;;  %1012 = vlog2.f32 %v496_v10  ;;  %v505_v49 = vadd.f32 1.0, %v1609_v35  ;;  %vm552_vm7 = vcmp.le.f32.partialorder %v548_v56, 0.0  ;;  %v493_v50 = vand.u32 2147483647, %v1447_v33 }
  0x77   : > { %vm1642_vm5 = vmxor %vm1575_vm12, %vm1133_vm11  ;;  %v500_v51 = vadd.f32 1.0, %v499_v47  ;;  %v508_v23 = vmul.f32 -0.5, %v1609_v35  ;;  %vm553_vm12 = vcmp.le.f32.partialorder %v549_v9, 0.0  ;;  %v502_v60 = vand.u32 2147483647, %v1587_v61 }
  0x78   : > { %vm1651_vm1 = vmxor %vm1581_vm15, %vm1133_vm11  ;;  %1014 = vlog2.f32 %v505_v49  ;;  %v627_v39 = vadd.f32 %v1233_v1, %v1230_v0  ;;  %v563_v57 = vmul.f32 %v1271_v14, %v1245_v5  ;;  %v564_v20 = vmul.f32 %v1274_v15, %v1248_v6 }
  0x79   : > { %vm1660_vm2 = vmand %vm550_vm10, %vm1624_vm13  ;;  %v483_v28 = vmul.f32 %v1567_v55, %v482_v46  ;;  %v509_v18 = vadd.f32 1.0, %v508_v23  ;;  %vm1686_vm10 = vcmp.lt.f32.partialorder %v484_v52, 0.0004427343  ;;  %v492_v14 = vmul.f32 %v1447_v33, %v491_v22 }
  0x7a   : > { %vm1670_vm15 = vmand %vm551_vm14, %vm1634_vm0  ;;  %v1009_v54 = vpop.eup %1008  ;;  %v511_v29 = vand.u32 2147483647, %v1609_v35  ;;  %v628_v15 = vadd.f32 %v627_v39, %v1236_v2  ;;  %v1906_v43 = vmov 0  ;;  %v565_v36 = vmul.f32 %v1283_v19, %v1251_v7 }
  0x7b   : > { %vm1682_vm6 = vmand %vm552_vm7, %vm1642_vm5  ;;  %v1011_v59 = vpop.eup %1010  ;;  %v480_v45 = vmul.f32 0.6931472, %v1009_v54  ;;  %vm1709_vm0 = vcmp.lt.f32.partialorder %v493_v50, 0.0004427343  ;;  %v501_v55 = vmul.f32 %v1587_v61, %v500_v51  ;;  %v510_v30 = vmul.f32 %v1609_v35, %v509_v18 }
  0x7c   : > { %vm1696_vm13 = vmand %vm553_vm12, %vm1651_vm1  ;;  %v1013_v16 = vpop.eup %1012  ;;  %v489_v21 = vmul.f32 0.6931472, %v1011_v59  ;;  %v629_v31 = vadd.f32 %v628_v15, %v1239_v3  ;;  %vm1922_vm1 = vcmp.le.f32.partialorder %v562_v63, 0.0  ;;  %v1134_v46 = vmov 0.0  }
  0x7d   : > { %v1907_v43 = vsel %vm1696_vm13, 4294967295, %v1906_v43  ;;  %vm1705_vm14 = vmxor %vm1591_vm8, %vm1133_vm11  ;;  %vm1721_vm8 = vcmp.lt.f32.partialorder %v502_v60, 0.0004427343  ;;  %v486_v61 = vsel %vm1686_vm10, %v483_v28, %v480_v45  ;;  %v498_v42 = vmul.f32 0.6931472, %v1013_v16 }
  0x7e   : > { %vm1717_vm7 = vmxor %vm1597_vm3, %vm1133_vm11  ;;  %v1015_v32 = vpop.eup %1014  ;;  %vm568_vm3 = vcmp.le.f32.partialorder %v564_v20, 0.0  ;;  %v495_v34 = vsel %vm1709_vm0, %v492_v14, %v489_v21  ;;  %v514_v44 = vadd.f32 %v486_v61, %v1344_v27  ;;  %737 = vadd.xlane.f32.xlu0 %v629_v31  ;;  %vm569_vm10 = vcmp.le.f32.partialorder %v565_v36, 0.0 }
  0x7f   : > { %vm1729_vm12 = vmxor %vm1603_vm9, %vm1133_vm11  ;;  %vm1745_vm9 = vcmp.lt.f32.partialorder %v511_v29, 0.0004427343  ;;  %v504_v35 = vsel %vm1721_vm8, %v501_v55, %v498_v42  ;;  %v507_v8 = vmul.f32 0.6931472, %v1015_v32  ;;  %v515_v56 = vadd.f32 %v495_v34, %v1325_v58 }
  0x80   : > { %vm1739_vm5 = vmxor %vm1611_vm4, %vm1133_vm11  ;;  %vm1925_vm4 = vcmp.le.f32.partialorder %v563_v57, 0.0  ;;  %v516_v9 = vadd.f32 %v504_v35, %v1342_v26  ;;  %v878_v41 = vadd.f32 -0.6931472, %v514_v44  ;;  %v633_v22 = vadd.f32 %v1245_v5, %v1242_v4 }
  0x81   : > { %vm1753_vm13 = vmand %vm1922_vm1, %vm1705_vm14  ;;  %v513_v53 = vsel %vm1745_vm9, %v510_v30, %v507_v8  ;;  %v879_v58 = vadd.f32 -0.6931472, %v515_v56 }
  0x82   : > { %vm1763_vm11 = vmand %vm1925_vm4, %vm1717_vm7  ;;  %v517_v10 = vadd.f32 %v513_v53, %v1414_v37  ;;  %v880_v26 = vadd.f32 -0.6931472, %v516_v9  ;;  %v634_v38 = vadd.f32 %v633_v22, %v1248_v6 }
  0x83   : > { %vm1770_vm14 = vmand %vm568_vm3, %vm1729_vm12  ;;  %v609_v11 = vadd.f32 %v879_v58, %v878_v41 }
  0x84   : > { %vm1778_vm0 = vmand %vm569_vm10, %vm1739_vm5  ;;  %v881_v13 = vadd.f32 -0.6931472, %v517_v10  ;;  %v635_v39 = vadd.f32 %v634_v38, %v1251_v7 }
  0x85   : > { %vm578_vm7 = vmor %vm1660_vm2, %vm1753_vm13  ;;  %v610_v52 = vadd.f32 %v880_v26, %v609_v11  ;;  %vm1932_vm2 = vnez %v1907_v43 }
  0x86   : > { %vm579_vm8 = vmor %vm1670_vm15, %vm1763_vm11  ;;  %v882_v47 = vsel %vm578_vm7, 1.0, %v1134_v46 }
  0x87   : > { %vm580_vm5 = vmor %vm1682_vm6, %vm1770_vm14  ;;  %v883_v37 = vsel %vm579_vm8, 1.0, %v1134_v46  ;;  %v611_v51 = vadd.f32 %v881_v13, %v610_v52 }
  0x88   : > { %vm581_vm13 = vmor %vm1932_vm2, %vm1778_vm0  ;;  %v884_v49 = vsel %vm580_vm5, 1.0, %v1134_v46  ;;  %v621_v48 = vadd.f32 %v883_v37, %v882_v47 }
  0x89   : > { %v885_v50 = vsel %vm581_vm13, 1.0, %v1134_v46  ;;  %692 = vadd.xlane.f32.xlu1 %v611_v51 }
  0x8a   : > { %v622_v23 = vadd.f32 %v884_v49, %v621_v48  ;;  %v641_v49 = vlaneseq }
  0x8c   : > { %v623_v60 = vadd.f32 %v885_v50, %v622_v23  ;;  %v642_v48 = vand.u32 127, %v641_v49  ;;  %v644_v50 = vshrl.u32 %v641_v49, 7 }
  0x8e   : > { %722 = vadd.xlane.f32.xlu2 %v623_v60  ;;  %vm671_vm15 = vcmp.eq.s32.totalorder %v642_v48, 1  ;;  %vm655_vm6 = vcmp.eq.s32.totalorder %v644_v50, 0  ;;  %vm656_vm1 = vcmp.eq.s32.totalorder %v642_v48, 0  ;;  %vm686_vm9 = vcmp.eq.s32.totalorder %v642_v48, 2 }
  0x8f   : > { %vm672_vm12 = vmand %vm655_vm6, %vm671_vm15  ;;  %vm701_vm10 = vcmp.eq.s32.totalorder %v642_v48, 3  ;;  %vm716_vm11 = vcmp.eq.s32.totalorder %v642_v48, 4  ;;  %vm731_vm0 = vcmp.eq.s32.totalorder %v642_v48, 5  ;;  %vm746_vm8 = vcmp.eq.s32.totalorder %v642_v48, 6 }
  0x90   : > { %vm657_vm3 = vmand %vm655_vm6, %vm656_vm1  ;;  %vm761_vm2 = vcmp.eq.s32.totalorder %v642_v48, 7 }
  0x91   : > { %752 = vadd.xlane.f32.xlu1 %v635_v39  ;;  %vm687_vm4 = vmand %vm655_vm6, %vm686_vm9 }
  0x92   : > { %vm702_vm14 = vmand %vm655_vm6, %vm701_vm10 }
  0x93   : > { %vm717_vm7 = vmand %vm655_vm6, %vm716_vm11 }
  0x94   : > { %vm732_vm5 = vmand %vm655_vm6, %vm731_vm0 }
  0x95   : > { %vm747_vm13 = vmand %vm655_vm6, %vm746_vm8 }
  0x96   : > { %vm762_vm15 = vmand %vm655_vm6, %vm761_vm2 }
  0xa7   : > { %v708_v55 = vpop.xlane.xlu2 %707 }
  0xa8   : > { %v709_v19 = vrot.slane %v708_v55, 4 }
  0xaa   : > { %v710_v25 = vadd.f32 %v709_v19, %v708_v55 }
  0xac   : > { %v711_v12 = vrot.slane %v710_v25, 2 }
  0xae   : > { %v712_v62 = vadd.f32 %v711_v12, %v710_v25 }
  0xb0   : > { %v713_v9 = vrot.slane %v712_v62, 1 }
  0xb2   : > { %v714_v26 = vadd.f32 %v713_v9, %v712_v62 }
  0xbc   : > { %v647_v40 = vpop.xlane.xlu0 %646 }
  0xbd   : > { %v648_v4 = vrot.slane %v647_v40, 4 }
  0xbf   : > { %v649_v5 = vadd.f32 %v648_v4, %v647_v40 }
  0xc1   : > { %v650_v57 = vrot.slane %v649_v5, 2 }
  0xc3   : > { %v651_v20 = vadd.f32 %v650_v57, %v649_v5 }
  0xc5   : > { %v652_v28 = vrot.slane %v651_v20, 1 }
  0xc7   : > { %v653_v18 = vadd.f32 %v652_v28, %v651_v20 }
  0xc9   : > { %893 = vpush %v653_v18 }
  0xde   : > { %v663_v54 = vpop.xlane.xlu0 %662 }
  0xdf   : > { %v664_v0 = vrot.slane %v663_v54, 4 }
  0xe1   : > { %v665_v1 = vadd.f32 %v664_v0, %v663_v54 }
  0xe3   : > { %v666_v14 = vrot.slane %v665_v1, 2 }
  0xe5   : > { %v667_v29 = vadd.f32 %v666_v14, %v665_v1 }
  0xe6   : > { %v678_v15 = vpop.xlane.xlu1 %677 }
  0xe7   : > { %v679_v6 = vrot.slane %v678_v15, 4  ;;  %v668_v59 = vrot.slane %v667_v29, 1 }
  0xe9   : > { %v680_v43 = vadd.f32 %v679_v6, %v678_v15  ;;  %v669_v36 = vadd.f32 %v668_v59, %v667_v29 }
  0xeb   : > { %v681_v7 = vrot.slane %v680_v43, 2  ;;  %895 = vpush %v669_v36 }
  0xed   : > { %v682_v33 = vadd.f32 %v681_v7, %v680_v43 }
  0xef   : > { %v683_v45 = vrot.slane %v682_v33, 1 }
  0xf1   : > { %v684_v2 = vadd.f32 %v683_v45, %v682_v33  ;;  %v738_v16 = vpop.xlane.xlu0 %737 }
  0xf2   : > { %v739_v21 = vrot.slane %v738_v16, 4 }
  0xf3   : > { %897 = vpush %v684_v2 }
  0xf4   : > { %v740_v31 = vadd.f32 %v739_v21, %v738_v16 }
  0xf6   : > { %v741_v30 = vrot.slane %v740_v31, 2 }
  0xf8   : > { %v742_v24 = vadd.f32 %v741_v30, %v740_v31 }
  0xfa   : > { %v743_v53 = vrot.slane %v742_v24, 1  ;;  %s894_s17 = spop %893 }
  0xfb   : > { %v658_v23 = vstv %s894_s17 }
  0xfc   : > { %v693_v61 = vpop.xlane.xlu1 %692  ;;  %v744_v47 = vadd.f32 %v743_v53, %v742_v24  ;;  %v659_v60 = vsel %vm657_vm3, %v658_v23, 0.0 }
  0xfd   : > { %v694_v42 = vrot.slane %v693_v61, 4 }
  0xff   : > { %v695_v3 = vadd.f32 %v694_v42, %v693_v61 }
 0x101   : > { %v723_v32 = vpop.xlane.xlu2 %722  ;;  %v696_v44 = vrot.slane %v695_v3, 2 }
 0x102   : > { %v724_v34 = vrot.slane %v723_v32, 4 }
 0x103   : > { %v697_v8 = vadd.f32 %v696_v44, %v695_v3 }
 0x104   : > { %v725_v35 = vadd.f32 %v724_v34, %v723_v32  ;;  %v753_v27 = vpop.xlane.xlu1 %752 }
 0x105   : > { %v754_v41 = vrot.slane %v753_v27, 4  ;;  %v698_v17 = vrot.slane %v697_v8, 1 }
 0x106   : > { %v726_v56 = vrot.slane %v725_v35, 2 }
 0x107   : > { %v755_v63 = vadd.f32 %v754_v41, %v753_v27  ;;  %v699_v10 = vadd.f32 %v698_v17, %v697_v8 }
 0x108   : > { %v727_v58 = vadd.f32 %v726_v56, %v725_v35 }
 0x109   : > { %v756_v46 = vrot.slane %v755_v63, 2  ;;  %899 = vpush %v699_v10 }
 0x10a   : > { %v728_v11 = vrot.slane %v727_v58, 1  ;;  %901 = vpush %v714_v26 }
 0x10b   : > { %v757_v37 = vadd.f32 %v756_v46, %v755_v63 }
 0x10c   : > { %v729_v13 = vadd.f32 %v728_v11, %v727_v58 }
 0x10d   : > { %v758_v52 = vrot.slane %v757_v37, 1 }
 0x10e   : > { %903 = vpush %v729_v13 }
 0x10f   : > { %905 = vpush %v744_v47  ;;  %v759_v22 = vadd.f32 %v758_v52, %v757_v37 }
 0x111   : > { %907 = vpush %v759_v22 }
 0x11c   : > { %s896_s18 = spop %895 }
 0x11d   : > { %v673_v51 = vstv %s896_s18 }
 0x11e   : > { %v674_v38 = vsel %vm672_vm12, %v673_v51, 0.0 }
 0x11f   : > { %v675_v39 = vadd.f32 %v674_v38, %v659_v60 }
 0x124   : > { %s898_s22 = spop %897 }
 0x125   : > { %v688_v40 = vstv %s898_s22  ;;  %s1066_s22 = scalar_lea.hbm %s1851_s1, 16 }
 0x126   : > { %v689_v4 = vsel %vm687_vm4, %v688_v40, 0.0  ;;  %p1068_p8 = scmp.lt.s32.totalorder %s1066_s22, %s1062_s16 }
 0x127   : > { %v690_v5 = vadd.f32 %v689_v4, %v675_v39 }
 0x128   : > { %p1069_p10 = por %p1068_p8, %p1067_p7 }
 0x12a   : > { %p1070_p13 = pnand %p1069_p10, %p1065_p6 }
 0x13a   : > { %s900_s23 = spop %899 }
 0x13b   : > { %v703_v57 = vstv %s900_s23  ;;  %s902_s24 = spop %901 }
 0x13c   : > { %v704_v20 = vsel %vm702_vm14, %v703_v57, 0.0  ;;  %v718_v28 = vstv %s902_s24 }
 0x13d   : > { %v705_v18 = vadd.f32 %v704_v20, %v690_v5  ;;  %v719_v54 = vsel %vm717_vm7, %v718_v28, 0.0 }
 0x13f   : > { %s904_s27 = spop %903  ;;  %v720_v1 = vadd.f32 %v719_v54, %v705_v18 }
 0x140   : > { %v733_v0 = vstv %s904_s27  ;;  %s906_s28 = spop %905 }
 0x141   : > { %v748_v14 = vstv %s906_s28  ;;  %v734_v29 = vsel %vm732_vm5, %v733_v0, 0.0 }
 0x142   : > { %v735_v15 = vadd.f32 %v734_v29, %v720_v1  ;;  %v749_v6 = vsel %vm747_vm13, %v748_v14, 0.0  ;;  %s908_s4 = spop %907 }
 0x143   : > { %v763_v43 = vstv %s908_s4 }
 0x144   : > { %v750_v59 = vadd.f32 %v749_v6, %v735_v15  ;;  %v764_v36 = vsel %vm762_vm15, %v763_v43, 0.0 }
 0x146   : > { %v765_v7 = vadd.f32 %v764_v36, %v750_v59 }
 0x148   : > { %766 = vst [vmem:[%s151_s9] sm:$0xff] %v765_v7 }
 0x149   : > { %1073 = shalt.err (!%p1070_p13)
}
 0x14a   : > { %911 = dma.vmem_to_hbm [thread:$0]  (%p1196_p9), %s781_s3, 128, %s783_s5, %s768_s13  }
 0x14b PF: > { %s794_s12 = sand.u32 1, %s1108_s6   ;;  %p918_p0 = pnand %p865_p12, %p1203_p11 }
 0x14c   : > { %s795_s25 = scalar_lea.sflag [#allocation12], %s794_s12 }
 0x14d   : > { %p919_p1 = pneg %p918_p0 }
 0x14f   : > { %1103 = dma.done.wait (%p919_p1), %s795_s25, 128  }
 0x150   : > { %1105 = vsyncadd (%p919_p1), %s795_s25, 4294967168  ;;  %s17_s11 = sadd.s32 1, %s1128_s11   ;;  %s1933_s6 = smov %s1112_s7 }
 0x151   : > { %p14_p2 = scmp.ge.s32.totalorder %s17_s11, 4   ;;  %s1934_s7 = smov %s1116_s8 }
 0x152   : > { %s1935_s8 = smov %s1201_s20  ;;  %s1936_s9 = smov %s1124_s10 }
 0x153   : > { %s1937_s10 = smov %s1939_s14  ;;  %16 = sbr.rel (!%p14_p2) target bundleno = 6 (0x6), region = 77 }
 0x158   :  { %801 = vsyncpa [#allocation11], 1 }
 0x159   :  { %803 = vsyncpa [#allocation11 + $0x1], 1 }
 0x15a   :  { %804 = vsyncpa [#allocation12], 1 }
 0x15b   :  { %806 = vsyncpa [#allocation12 + $0x1], 1 }

</bundles_post_ra>
